<compile_context>
chip_gen: v7x
topology: tpu7x:2x2x1
jax: 0.10.0
libtpu: 0.0.40
codegen_flags: <defaults>
</compile_context>

<pallas_src>
import jax
import jax.numpy as jnp
from jax import lax
from jax.experimental import pallas as pl
from jax.experimental.pallas import tpu as pltpu


def _round_up(x, m):
    return ((x + m - 1) // m) * m


def _pad_gated(w, rows_p, h, hp):
    """(rows, 3h) -> (rows_p, 3hp); each gate block lane-aligned at g*hp."""
    rows = w.shape[0]
    out = jnp.zeros((rows_p, 3 * hp), w.dtype)
    for g in range(3):
        out = out.at[:rows, g * hp:g * hp + h].set(w[:, g * h:(g + 1) * h])
    return out


def _const_spec(shape):
    """BlockSpec for a grid-invariant input: single-buffered when supported."""
    zeros = (0,) * len(shape)
    index_map = lambda i: zeros
    try:
        return pl.BlockSpec(shape, index_map, pipeline_mode=pl.Buffered(1))
    except (TypeError, AttributeError):
        return pl.BlockSpec(shape, index_map)


def _make_kernel(t_chunk, bp, hp):
    def kernel(emb_ref, lens_ref, w_ih_ref, w_hh_ref, b_ih_ref, b_hn_ref,
               b_gen_ref, w_gen_hbm, out_ref,
               h_scr, gi_scr, wgen_buf, wgen_sem):
        i = pl.program_id(0)
        n_chunks = pl.num_programs(0) - 1        # grid is skewed by one step

        @pl.when(i == 0)
        def _init():
            h_scr[...] = jnp.zeros_like(h_scr)

        # ---- Stage A (one chunk AHEAD of the recurrence): hoisted input
        # projection for chunk i.  One big bf16 MXU matmul (f32 accumulate)
        # into slot i%2; off the serial critical path thanks to the skew.
        @pl.when(i < n_chunks)
        def _project():
            slot = i & 1
            gi_scr[slot] = (jnp.dot(emb_ref[...], w_ih_ref[...],
                                    preferred_element_type=jnp.float32)
                            + b_ih_ref[...])

        # ---- Prefetch the generator weights one grid step early so the
        # HBM->VMEM copy hides behind the last chunk's serial recurrence.
        @pl.when(i == n_chunks - 1)
        def _prefetch_generator():
            pltpu.make_async_copy(w_gen_hbm, wgen_buf, wgen_sem).start()

        # ---- Stage B: serial GRU recurrence for chunk i-1, reading the GI
        # projection produced at the previous grid step (other slot).
        @pl.when(i > 0)
        def _recurrence():
            c = i - 1
            slot = c & 1
            gi_chunk = gi_scr.at[slot]                          # ref view
            w_hh = w_hh_ref[...]                                # (hp, 3hp) bf16
            b_hn = jnp.broadcast_to(b_hn_ref[...], (bp, hp))    # hoisted
            lens = lens_ref[...]                                # (bp, 1) int32
            t_base = c * t_chunk

            def step(s, h):
                row = pl.multiple_of(s * bp, bp)
                gi = gi_chunk[pl.ds(row, bp), :]                # (bp, 3hp) f32
                gh = jnp.dot(h.astype(jnp.bfloat16), w_hh,
                             preferred_element_type=jnp.float32)
                # Gate slices are lane-aligned (hp % 128 == 0): pure VPU ops.
                # b_ih already carries the r/z thirds of b_hh (folded in the
                # wrapper); only b_hn remains here because it is scaled by r.
                r = jax.nn.sigmoid(gi[:, 0:hp] + gh[:, 0:hp])
                z = jax.nn.sigmoid(gi[:, hp:2 * hp] + gh[:, hp:2 * hp])
                n = jnp.tanh(gi[:, 2 * hp:3 * hp]
                             + r * (gh[:, 2 * hp:3 * hp] + b_hn))
                h_new = (1.0 - z) * n + z * h
                # pack_padded_sequence semantics: freeze state past seq end.
                valid = lens > (t_base + s)                     # (bp, 1) bool
                return jnp.where(valid, h_new, h)

            h_scr[...] = lax.fori_loop(0, t_chunk, step, h_scr[...],
                                       unroll=True)

        # ---- Generator: Linear(H, V) + log_softmax on the final hidden.
        @pl.when(i == n_chunks)
        def _generator():
            pltpu.make_async_copy(w_gen_hbm, wgen_buf, wgen_sem).wait()
            # Padded vocab columns carry a -1e30 bias (set in the wrapper) so
            # they vanish in the log-sum-exp.
            logits = (jnp.dot(h_scr[...].astype(jnp.bfloat16), wgen_buf[...],
                              preferred_element_type=jnp.float32)
                      + b_gen_ref[...])
            m = jnp.max(logits, axis=-1, keepdims=True)
            lse = jnp.log(jnp.sum(jnp.exp(logits - m),
                                  axis=-1, keepdims=True)) + m
            out_ref[...] = logits - lse

    return kernel


def encoder_decoder_forward(params, src_idx, src_mask, src_lengths,
                            *, t_chunk=32):
    """Wrapper: embedding gather + padding/layout glue in JAX, hot path in Pallas."""
    del src_mask  # see NOTE at top of file
    embed = params["embed"]                         # (V, E)
    w_ih, w_hh = params["w_ih"], params["w_hh"]     # (E, 3H), (H, 3H)
    b_ih, b_hh = params["b_ih"], params["b_hh"]     # (1, 3H)
    w_gen, b_gen = params["w_gen"], params["b_gen"]  # (H, V), (1, V)

    B, T = src_idx.shape
    E = embed.shape[1]
    H = w_hh.shape[0]
    V = w_gen.shape[1]

    # TPU-friendly padded sizes: sublane-aligned batch, lane-aligned features.
    Bp = _round_up(max(B, 8), 8)
    Ep = _round_up(E, 128)
    Hp = _round_up(H, 128)
    Vp = _round_up(V, 128)
    tT = min(t_chunk, T)
    Tp = _round_up(T, tT)
    n_chunks = Tp // tT

    # Embedding gather + time-major flatten: row index = t*Bp + b.
    # TODO(synk): fuse this gather into the kernel (scalar-prefetched src_idx
    # + manual row DMA) to halve HBM traffic on the streamed operand.
    emb = jnp.take(embed, src_idx, axis=0)                      # (B, T, E)
    emb = jnp.transpose(emb, (1, 0, 2))                         # (T, B, E)
    emb = jnp.pad(emb, ((0, Tp - T), (0, Bp - B), (0, Ep - E)))
    emb = emb.reshape(Tp * Bp, Ep).astype(jnp.bfloat16)

    lens = jnp.zeros((Bp, 1), jnp.int32).at[:B, 0].set(
        src_lengths.astype(jnp.int32))

    # Fold the r/z thirds of b_hh into b_ih (added once in the chunk GI
    # matmul); keep only the "n" third for the in-loop r * (gh_n + b_hn) term.
    b_ih_fold = b_ih.at[:, :2 * H].add(b_hh[:, :2 * H])
    b_hn = jnp.zeros((1, Hp), jnp.float32).at[:, :H].set(
        b_hh[:, 2 * H:3 * H].astype(jnp.float32))

    # Per-gate lane-aligned, zero-padded weights (bf16) and biases (f32).
    w_ih_p = _pad_gated(w_ih, Ep, H, Hp).astype(jnp.bfloat16)
    w_hh_p = _pad_gated(w_hh, Hp, H, Hp).astype(jnp.bfloat16)
    b_ih_p = _pad_gated(b_ih_fold, 1, H, Hp).astype(jnp.float32)
    w_gen_p = jnp.zeros((Hp, Vp), jnp.float32).at[:H, :V].set(
        w_gen).astype(jnp.bfloat16)
    b_gen_p = jnp.full((1, Vp), -1e30, jnp.float32).at[:, :V].set(
        b_gen.astype(jnp.float32))

    kernel = _make_kernel(tT, Bp, Hp)

    # Explicit VMEM budget; clamp to v7x's 64 MiB physical ceiling.
    f32, bf16 = 4, 2
    vmem_bytes = (
        2 * tT * Bp * Ep * bf16                       # emb chunk (x2 buffers)
        + 2 * ((Ep + Hp) * 3 * Hp * bf16              # w_ih, w_hh (margin x2)
               + (4 * Hp + Vp + Bp) * f32)            # b_ih, b_hn, b_gen, lens
        + 2 * Bp * Vp * f32                           # output block
        + Bp * Hp * f32                               # h_scr
        + 2 * tT * Bp * 3 * Hp * f32                  # gi_scr (2 slots)
        + Hp * Vp * bf16)                             # generator weight buffer
    vmem_bytes = int(min(max(vmem_bytes + (4 << 20), 32 << 20), 64 << 20))

    out = pl.pallas_call(
        kernel,
        out_shape=jax.ShapeDtypeStruct((Bp, Vp), jnp.float32),
        grid_spec=pltpu.PrefetchScalarGridSpec(
            num_scalar_prefetch=0,
            # Skewed grid: step i projects chunk i, recurs over chunk i-1.
            grid=(n_chunks + 1,),
            in_specs=[
                pl.BlockSpec((tT * Bp, Ep),
                             lambda i: (jnp.minimum(i, n_chunks - 1), 0)),
                _const_spec((Bp, 1)),                 # lengths
                _const_spec((Ep, 3 * Hp)),            # w_ih
                _const_spec((Hp, 3 * Hp)),            # w_hh
                _const_spec((1, 3 * Hp)),             # b_ih (+ folded b_hh rz)
                _const_spec((1, Hp)),                 # b_hn
                _const_spec((1, Vp)),                 # b_gen
                pl.BlockSpec(memory_space=pl.ANY),    # w_gen stays in HBM
            ],
            out_specs=pl.BlockSpec((Bp, Vp), lambda i: (0, 0)),
            scratch_shapes=[
                pltpu.VMEM((Bp, Hp), jnp.float32),            # hidden state
                pltpu.VMEM((2, tT * Bp, 3 * Hp), jnp.float32),  # skewed GI
                pltpu.VMEM((Hp, Vp), jnp.bfloat16),           # w_gen buffer
                pltpu.SemaphoreType.DMA(()),                  # w_gen DMA sem
            ],
        ),
        compiler_params=pltpu.CompilerParams(
            dimension_semantics=("arbitrary",),
            vmem_limit_bytes=vmem_bytes),
    )(emb, lens, w_ih_p, w_hh_p, b_ih_p, b_hn, b_gen_p, w_gen_p)

    return out[:B, :V]


def reference_forward(params, src_idx, src_lengths):
    """Pure-JAX reference using the same bf16 weight/activation quantization."""
    q = lambda x: x.astype(jnp.bfloat16).astype(jnp.float32)
    embed = params["embed"]
    B, T = src_idx.shape
    H = params["w_hh"].shape[0]
    emb = q(jnp.take(embed, src_idx, axis=0))                   # (B, T, E)
    w_ih, w_hh, w_gen = q(params["w_ih"]), q(params["w_hh"]), q(params["w_gen"])
    b_ih, b_hh, b_gen = params["b_ih"], params["b_hh"], params["b_gen"]
    h = jnp.zeros((B, H), jnp.float32)
    for t in range(T):
        gi = emb[:, t, :] @ w_ih + b_ih
        gh = q(h) @ w_hh + b_hh
        r = jax.nn.sigmoid(gi[:, 0:H] + gh[:, 0:H])
        z = jax.nn.sigmoid(gi[:, H:2 * H] + gh[:, H:2 * H])
        n = jnp.tanh(gi[:, 2 * H:3 * H] + r * gh[:, 2 * H:3 * H])
        h_new = (1.0 - z) * n + z * h
        valid = (t < src_lengths)[:, None]
        h = jnp.where(valid, h_new, h)
    logits = q(h) @ w_gen + b_gen
    return jax.nn.log_softmax(logits, axis=-1)


if __name__ == "__main__":
    # Small, deterministic problem.
    VOCAB, EMB, HID = 16, 32, 32
    B, T = 2, 8

    key = jax.random.PRNGKey(0)
    ks = jax.random.split(key, 9)
    params = {
        "embed": 0.1 * jax.random.normal(ks[0], (VOCAB, EMB), jnp.float32),
        "w_ih":  0.1 * jax.random.normal(ks[1], (EMB, 3 * HID), jnp.float32),
        "w_hh":  0.1 * jax.random.normal(ks[2], (HID, 3 * HID), jnp.float32),
        "b_ih":  0.1 * jax.random.normal(ks[3], (1, 3 * HID), jnp.float32),
        "b_hh":  0.1 * jax.random.normal(ks[4], (1, 3 * HID), jnp.float32),
        "w_gen": 0.1 * jax.random.normal(ks[5], (HID, VOCAB), jnp.float32),
        "b_gen": 0.1 * jax.random.normal(ks[6], (1, VOCAB), jnp.float32),
    }

    src_idx = jax.random.randint(ks[7], (B, T), 0, VOCAB, dtype=jnp.int32)
    src_lengths = jnp.array([T, 5], dtype=jnp.int32)
    src_mask = (jnp.arange(T)[None, :] < src_lengths[:, None])[:, None, :]  # (B,1,T)

    out = encoder_decoder_forward(params, src_idx, src_mask, src_lengths)
    out = jax.block_until_ready(out)

    ref = reference_forward(params, src_idx, src_lengths)
    assert out.shape == (B, VOCAB)
    assert jnp.allclose(out, ref, atol=1e-4, rtol=1e-4), "mismatch vs reference"

    print("KERNEL_OK")
</pallas_src>

<mosaic_0001>
module attributes {stable_mosaic.version = 11 : i64} {
  func.func @kernel(%arg0: i32, %arg1: memref<64x128xbf16, #tpu.memory_space<vmem>>, %arg2: memref<8x1xi32, #tpu.memory_space<vmem>>, %arg3: memref<128x384xbf16, #tpu.memory_space<vmem>>, %arg4: memref<128x384xbf16, #tpu.memory_space<vmem>>, %arg5: memref<1x384xf32, #tpu.memory_space<vmem>>, %arg6: memref<1x128xf32, #tpu.memory_space<vmem>>, %arg7: memref<1x128xf32, #tpu.memory_space<vmem>>, %arg8: memref<128x128xbf16, #tpu.memory_space<any>>, %arg9: memref<8x128xf32, #tpu.memory_space<vmem>>, %arg10: memref<8x128xf32, #tpu.memory_space<vmem>>, %arg11: memref<2x64x384xf32, #tpu.memory_space<vmem>>, %arg12: memref<128x128xbf16, #tpu.memory_space<vmem>>, %arg13: memref<!tpu.dma_semaphore, #tpu.memory_space<semaphore_mem>>) attributes {dimension_semantics = [#tpu.dimension_semantics<arbitrary>], iteration_bounds = array<i64: 2>, scalar_prefetch = 0 : i64, scratch_operands = 4 : i64, tpu.core_type = #tpu.core_type<tc>, window_params = [{transform_indices = @transform_0, window_bounds = array<i64: 64, 128>}, {pipeline_mode = #tpu.pipeline_mode<synchronous>, transform_indices = @transform_1, window_bounds = array<i64: 8, 1>}, {pipeline_mode = #tpu.pipeline_mode<synchronous>, transform_indices = @transform_2, window_bounds = array<i64: 128, 384>}, {pipeline_mode = #tpu.pipeline_mode<synchronous>, transform_indices = @transform_3, window_bounds = array<i64: 128, 384>}, {pipeline_mode = #tpu.pipeline_mode<synchronous>, transform_indices = @transform_4, window_bounds = array<i64: 1, 384>}, {pipeline_mode = #tpu.pipeline_mode<synchronous>, transform_indices = @transform_5, window_bounds = array<i64: 1, 128>}, {pipeline_mode = #tpu.pipeline_mode<synchronous>, transform_indices = @transform_6, window_bounds = array<i64: 1, 128>}, {}, {pipeline_mode = #tpu.pipeline_mode<synchronous>, transform_indices = @transform_8, window_bounds = array<i64: 8, 128>}]} {
    %c0_i32 = arith.constant 0 : i32
    %0 = arith.cmpi eq, %arg0, %c0_i32 : i32
    %1 = arith.extui %0 : i1 to i32
    %c0_i32_0 = arith.constant 0 : i32
    %2 = arith.cmpi ne, %1, %c0_i32_0 : i32
    scf.if %2 {
      %cst = arith.constant 0.000000e+00 : f32
      %15 = vector.broadcast %cst : f32 to vector<8x128xf32>
      %c0 = arith.constant 0 : index
      %c0_8 = arith.constant 0 : index
      %16 = vector.load %arg10[%c0, %c0_8] : memref<8x128xf32, #tpu.memory_space<vmem>>, vector<8x128xf32>
      tpu.vector_store %arg10[%c0, %c0_8], %15 {strides = array<i32>} : memref<8x128xf32, #tpu.memory_space<vmem>>, vector<8x128xf32>,
    } else {
    }
    %c1_i32 = arith.constant 1 : i32
    %3 = arith.cmpi slt, %arg0, %c1_i32 : i32
    %4 = arith.extui %3 : i1 to i32
    %c0_i32_1 = arith.constant 0 : i32
    %5 = arith.cmpi ne, %4, %c0_i32_1 : i32
    scf.if %5 {
      %c1_i32_8 = arith.constant 1 : i32
      %15 = arith.andi %arg0, %c1_i32_8 : i32
      %c0 = arith.constant 0 : index
      %c0_9 = arith.constant 0 : index
      %16 = vector.load %arg1[%c0, %c0_9] : memref<64x128xbf16, #tpu.memory_space<vmem>>, vector<64x128xbf16>
      %c0_10 = arith.constant 0 : index
      %c0_11 = arith.constant 0 : index
      %17 = vector.load %arg3[%c0_10, %c0_11] : memref<128x384xbf16, #tpu.memory_space<vmem>>, vector<128x384xbf16>
      %cst = arith.constant dense<0.000000e+00> : vector<64x384xf32>
      %18 = tpu.matmul %16, %17, %cst {dimension_numbers = #tpu.dot_dimension_numbers<[1], [0], [0], [1], [0, 0, 1, 1], [], []>} : vector<64x128xbf16>, vector<128x384xbf16>, vector<64x384xf32> -> vector<64x384xf32>
      %c0_12 = arith.constant 0 : index
      %c0_13 = arith.constant 0 : index
      %19 = vector.load %arg5[%c0_12, %c0_13] : memref<1x384xf32, #tpu.memory_space<vmem>>, vector<1x384xf32>
      %20 = vector.broadcast %19 : vector<1x384xf32> to vector<64x384xf32>
      %21 = arith.addf %18, %20 : vector<64x384xf32>
      %22 = arith.index_cast %15 : i32 to index
      %c0_14 = arith.constant 0 : index
      %c0_15 = arith.constant 0 : index
      %23 = vector.load %arg11[%22, %c0_14, %c0_15] : memref<2x64x384xf32, #tpu.memory_space<vmem>>, vector<1x64x384xf32>
      %24 = vector.shape_cast %23 : vector<1x64x384xf32> to vector<64x384xf32>
      %25 = vector.shape_cast %21 : vector<64x384xf32> to vector<1x64x384xf32>
      tpu.vector_store %arg11[%22, %c0_14, %c0_15], %25 {strides = array<i32>} : memref<2x64x384xf32, #tpu.memory_space<vmem>>, vector<1x64x384xf32>,
    } else {
    }
    %c0_i32_2 = arith.constant 0 : i32
    %6 = arith.cmpi eq, %arg0, %c0_i32_2 : i32
    %7 = arith.extui %6 : i1 to i32
    %c0_i32_3 = arith.constant 0 : i32
    %8 = arith.cmpi ne, %7, %c0_i32_3 : i32
    scf.if %8 {
      tpu.enqueue_dma source(%arg8 : memref<128x128xbf16, #tpu.memory_space<any>>) target(%arg12 : memref<128x128xbf16, #tpu.memory_space<vmem>>) target_semaphore(%arg13 : memref<!tpu.dma_semaphore, #tpu.memory_space<semaphore_mem>>)
    } else {
    }
    %c0_i32_4 = arith.constant 0 : i32
    %9 = arith.cmpi sgt, %arg0, %c0_i32_4 : i32
    %10 = arith.extui %9 : i1 to i32
    %c0_i32_5 = arith.constant 0 : i32
    %11 = arith.cmpi ne, %10, %c0_i32_5 : i32
    scf.if %11 {
      %c1_i32_8 = arith.constant 1 : i32
      %15 = arith.subi %arg0, %c1_i32_8 : i32
      %c1_i32_9 = arith.constant 1 : i32
      %16 = arith.andi %15, %c1_i32_9 : i32
      %c0 = arith.constant 0 : index
      %c0_10 = arith.constant 0 : index
      %17 = vector.load %arg4[%c0, %c0_10] : memref<128x384xbf16, #tpu.memory_space<vmem>>, vector<128x384xbf16>
      %c0_11 = arith.constant 0 : index
      %c0_12 = arith.constant 0 : index
      %18 = vector.load %arg6[%c0_11, %c0_12] : memref<1x128xf32, #tpu.memory_space<vmem>>, vector<1x128xf32>
      %19 = vector.shape_cast %18 : vector<1x128xf32> to vector<1x128xf32>
      %20 = vector.broadcast %19 : vector<1x128xf32> to vector<8x128xf32>
      %c0_13 = arith.constant 0 : index
      %c0_14 = arith.constant 0 : index
      %21 = vector.load %arg2[%c0_13, %c0_14] : memref<8x1xi32, #tpu.memory_space<vmem>>, vector<8x1xi32>
      %c8_i32 = arith.constant 8 : i32
      %22 = arith.muli %15, %c8_i32 : i32
      %c0_15 = arith.constant 0 : index
      %c0_16 = arith.constant 0 : index
      %23 = vector.load %arg10[%c0_15, %c0_16] : memref<8x128xf32, #tpu.memory_space<vmem>>, vector<8x128xf32>
      %c0_i32_17 = arith.constant 0 : i32
      %c8_i32_18 = arith.constant 8 : i32
      %24 = arith.muli %c0_i32_17, %c8_i32_18 : i32
      %25 = tpu.assume_multiple %24, 8 : i32
      %c0_i32_19 = arith.constant 0 : i32
      %c0_i32_20 = arith.constant 0 : i32
      %26 = tpu.memref_slice %arg11[%16, %c0_i32_19, %c0_i32_20] : memref<2x64x384xf32, #tpu.memory_space<vmem>> -> memref<1x64x384xf32, #tpu.memory_space<vmem>>
      %27 = tpu.memref_squeeze %26 : memref<1x64x384xf32, #tpu.memory_space<vmem>> -> memref<64x384xf32, #tpu.memory_space<vmem>>
      %28 = arith.index_cast %25 : i32 to index
      %c0_21 = arith.constant 0 : index
      %29 = vector.load %27[%28, %c0_21] : memref<64x384xf32, #tpu.memory_space<vmem>>, vector<8x384xf32>
      %30 = arith.truncf %23 : vector<8x128xf32> to vector<8x128xbf16>
      %cst = arith.constant dense<0.000000e+00> : vector<8x384xf32>
      %31 = tpu.matmul %30, %17, %cst {dimension_numbers = #tpu.dot_dimension_numbers<[1], [0], [0], [1], [0, 0, 1, 1], [], []>} : vector<8x128xbf16>, vector<128x384xbf16>, vector<8x384xf32> -> vector<8x384xf32>
      %32 = vector.extract_strided_slice %29 {offsets = [0, 0], sizes = [8, 128], strides = [1, 1]} : vector<8x384xf32> to vector<8x128xf32>
      %33 = vector.extract_strided_slice %31 {offsets = [0, 0], sizes = [8, 128], strides = [1, 1]} : vector<8x384xf32> to vector<8x128xf32>
      %34 = arith.addf %32, %33 : vector<8x128xf32>
      %35 = arith.negf %34 : vector<8x128xf32>
      %36 = math.exp %35 : vector<8x128xf32>
      %cst_22 = arith.constant 1.000000e+00 : f32
      %37 = vector.broadcast %cst_22 : f32 to vector<8x128xf32>
      %38 = arith.addf %37, %36 : vector<8x128xf32>
      %39 = arith.divf %37, %38 : vector<8x128xf32>
      %40 = vector.extract_strided_slice %29 {offsets = [0, 128], sizes = [8, 128], strides = [1, 1]} : vector<8x384xf32> to vector<8x128xf32>
      %41 = vector.extract_strided_slice %31 {offsets = [0, 128], sizes = [8, 128], strides = [1, 1]} : vector<8x384xf32> to vector<8x128xf32>
      %42 = arith.addf %40, %41 : vector<8x128xf32>
      %43 = arith.negf %42 : vector<8x128xf32>
      %44 = math.exp %43 : vector<8x128xf32>
      %cst_23 = arith.constant 1.000000e+00 : f32
      %45 = vector.broadcast %cst_23 : f32 to vector<8x128xf32>
      %46 = arith.addf %45, %44 : vector<8x128xf32>
      %47 = arith.divf %45, %46 : vector<8x128xf32>
      %48 = vector.extract_strided_slice %29 {offsets = [0, 256], sizes = [8, 128], strides = [1, 1]} : vector<8x384xf32> to vector<8x128xf32>
      %49 = vector.extract_strided_slice %31 {offsets = [0, 256], sizes = [8, 128], strides = [1, 1]} : vector<8x384xf32> to vector<8x128xf32>
      %50 = arith.addf %49, %20 : vector<8x128xf32>
      %51 = arith.mulf %39, %50 : vector<8x128xf32>
      %52 = arith.addf %48, %51 : vector<8x128xf32>
      %53 = math.tanh %52 : vector<8x128xf32>
      %cst_24 = arith.constant 1.000000e+00 : f32
      %54 = vector.broadcast %cst_24 : f32 to vector<8x128xf32>
      %55 = arith.subf %54, %47 : vector<8x128xf32>
      %56 = arith.mulf %55, %53 : vector<8x128xf32>
      %57 = arith.mulf %47, %23 : vector<8x128xf32>
      %58 = arith.addf %56, %57 : vector<8x128xf32>
      %59 = arith.addi %22, %c0_i32_17 : i32
      %60 = vector.broadcast %59 : i32 to vector<8x1xi32>
      %61 = arith.cmpi sgt, %21, %60 : vector<8x1xi32>
      %62 = vector.shape_cast %61 : vector<8x1xi1> to vector<8x1xi1>
      %63 = vector.broadcast %62 : vector<8x1xi1> to vector<8x128xi1>
      %64 = arith.select %63, %58, %23 : vector<8x128xi1>, vector<8x128xf32>
      %c1_i32_25 = arith.constant 1 : i32
      %c8_i32_26 = arith.constant 8 : i32
      %65 = arith.muli %c1_i32_25, %c8_i32_26 : i32
      %66 = tpu.assume_multiple %65, 8 : i32
      %c0_i32_27 = arith.constant 0 : i32
      %c0_i32_28 = arith.constant 0 : i32
      %67 = tpu.memref_slice %arg11[%16, %c0_i32_27, %c0_i32_28] : memref<2x64x384xf32, #tpu.memory_space<vmem>> -> memref<1x64x384xf32, #tpu.memory_space<vmem>>
      %68 = tpu.memref_squeeze %67 : memref<1x64x384xf32, #tpu.memory_space<vmem>> -> memref<64x384xf32, #tpu.memory_space<vmem>>
      %69 = arith.index_cast %66 : i32 to index
      %c0_29 = arith.constant 0 : index
      %70 = vector.load %68[%69, %c0_29] : memref<64x384xf32, #tpu.memory_space<vmem>>, vector<8x384xf32>
      %71 = arith.truncf %64 : vector<8x128xf32> to vector<8x128xbf16>
      %cst_30 = arith.constant dense<0.000000e+00> : vector<8x384xf32>
      %72 = tpu.matmul %71, %17, %cst_30 {dimension_numbers = #tpu.dot_dimension_numbers<[1], [0], [0], [1], [0, 0, 1, 1], [], []>} : vector<8x128xbf16>, vector<128x384xbf16>, vector<8x384xf32> -> vector<8x384xf32>
      %73 = vector.extract_strided_slice %70 {offsets = [0, 0], sizes = [8, 128], strides = [1, 1]} : vector<8x384xf32> to vector<8x128xf32>
      %74 = vector.extract_strided_slice %72 {offsets = [0, 0], sizes = [8, 128], strides = [1, 1]} : vector<8x384xf32> to vector<8x128xf32>
      %75 = arith.addf %73, %74 : vector<8x128xf32>
      %76 = arith.negf %75 : vector<8x128xf32>
      %77 = math.exp %76 : vector<8x128xf32>
      %cst_31 = arith.constant 1.000000e+00 : f32
      %78 = vector.broadcast %cst_31 : f32 to vector<8x128xf32>
      %79 = arith.addf %78, %77 : vector<8x128xf32>
      %80 = arith.divf %78, %79 : vector<8x128xf32>
      %81 = vector.extract_strided_slice %70 {offsets = [0, 128], sizes = [8, 128], strides = [1, 1]} : vector<8x384xf32> to vector<8x128xf32>
      %82 = vector.extract_strided_slice %72 {offsets = [0, 128], sizes = [8, 128], strides = [1, 1]} : vector<8x384xf32> to vector<8x128xf32>
      %83 = arith.addf %81, %82 : vector<8x128xf32>
      %84 = arith.negf %83 : vector<8x128xf32>
      %85 = math.exp %84 : vector<8x128xf32>
      %cst_32 = arith.constant 1.000000e+00 : f32
      %86 = vector.broadcast %cst_32 : f32 to vector<8x128xf32>
      %87 = arith.addf %86, %85 : vector<8x128xf32>
      %88 = arith.divf %86, %87 : vector<8x128xf32>
      %89 = vector.extract_strided_slice %70 {offsets = [0, 256], sizes = [8, 128], strides = [1, 1]} : vector<8x384xf32> to vector<8x128xf32>
      %90 = vector.extract_strided_slice %72 {offsets = [0, 256], sizes = [8, 128], strides = [1, 1]} : vector<8x384xf32> to vector<8x128xf32>
      %91 = arith.addf %90, %20 : vector<8x128xf32>
      %92 = arith.mulf %80, %91 : vector<8x128xf32>
      %93 = arith.addf %89, %92 : vector<8x128xf32>
      %94 = math.tanh %93 : vector<8x128xf32>
      %cst_33 = arith.constant 1.000000e+00 : f32
      %95 = vector.broadcast %cst_33 : f32 to vector<8x128xf32>
      %96 = arith.subf %95, %88 : vector<8x128xf32>
      %97 = arith.mulf %96, %94 : vector<8x128xf32>
      %98 = arith.mulf %88, %64 : vector<8x128xf32>
      %99 = arith.addf %97, %98 : vector<8x128xf32>
      %100 = arith.addi %22, %c1_i32_25 : i32
      %101 = vector.broadcast %100 : i32 to vector<8x1xi32>
      %102 = arith.cmpi sgt, %21, %101 : vector<8x1xi32>
      %103 = vector.shape_cast %102 : vector<8x1xi1> to vector<8x1xi1>
      %104 = vector.broadcast %103 : vector<8x1xi1> to vector<8x128xi1>
      %105 = arith.select %104, %99, %64 : vector<8x128xi1>, vector<8x128xf32>
      %c2_i32 = arith.constant 2 : i32
      %c8_i32_34 = arith.constant 8 : i32
      %106 = arith.muli %c2_i32, %c8_i32_34 : i32
      %107 = tpu.assume_multiple %106, 8 : i32
      %c0_i32_35 = arith.constant 0 : i32
      %c0_i32_36 = arith.constant 0 : i32
      %108 = tpu.memref_slice %arg11[%16, %c0_i32_35, %c0_i32_36] : memref<2x64x384xf32, #tpu.memory_space<vmem>> -> memref<1x64x384xf32, #tpu.memory_space<vmem>>
      %109 = tpu.memref_squeeze %108 : memref<1x64x384xf32, #tpu.memory_space<vmem>> -> memref<64x384xf32, #tpu.memory_space<vmem>>
      %110 = arith.index_cast %107 : i32 to index
      %c0_37 = arith.constant 0 : index
      %111 = vector.load %109[%110, %c0_37] : memref<64x384xf32, #tpu.memory_space<vmem>>, vector<8x384xf32>
      %112 = arith.truncf %105 : vector<8x128xf32> to vector<8x128xbf16>
      %cst_38 = arith.constant dense<0.000000e+00> : vector<8x384xf32>
      %113 = tpu.matmul %112, %17, %cst_38 {dimension_numbers = #tpu.dot_dimension_numbers<[1], [0], [0], [1], [0, 0, 1, 1], [], []>} : vector<8x128xbf16>, vector<128x384xbf16>, vector<8x384xf32> -> vector<8x384xf32>
      %114 = vector.extract_strided_slice %111 {offsets = [0, 0], sizes = [8, 128], strides = [1, 1]} : vector<8x384xf32> to vector<8x128xf32>
      %115 = vector.extract_strided_slice %113 {offsets = [0, 0], sizes = [8, 128], strides = [1, 1]} : vector<8x384xf32> to vector<8x128xf32>
      %116 = arith.addf %114, %115 : vector<8x128xf32>
      %117 = arith.negf %116 : vector<8x128xf32>
      %118 = math.exp %117 : vector<8x128xf32>
      %cst_39 = arith.constant 1.000000e+00 : f32
      %119 = vector.broadcast %cst_39 : f32 to vector<8x128xf32>
      %120 = arith.addf %119, %118 : vector<8x128xf32>
      %121 = arith.divf %119, %120 : vector<8x128xf32>
      %122 = vector.extract_strided_slice %111 {offsets = [0, 128], sizes = [8, 128], strides = [1, 1]} : vector<8x384xf32> to vector<8x128xf32>
      %123 = vector.extract_strided_slice %113 {offsets = [0, 128], sizes = [8, 128], strides = [1, 1]} : vector<8x384xf32> to vector<8x128xf32>
      %124 = arith.addf %122, %123 : vector<8x128xf32>
      %125 = arith.negf %124 : vector<8x128xf32>
      %126 = math.exp %125 : vector<8x128xf32>
      %cst_40 = arith.constant 1.000000e+00 : f32
      %127 = vector.broadcast %cst_40 : f32 to vector<8x128xf32>
      %128 = arith.addf %127, %126 : vector<8x128xf32>
      %129 = arith.divf %127, %128 : vector<8x128xf32>
      %130 = vector.extract_strided_slice %111 {offsets = [0, 256], sizes = [8, 128], strides = [1, 1]} : vector<8x384xf32> to vector<8x128xf32>
      %131 = vector.extract_strided_slice %113 {offsets = [0, 256], sizes = [8, 128], strides = [1, 1]} : vector<8x384xf32> to vector<8x128xf32>
      %132 = arith.addf %131, %20 : vector<8x128xf32>
      %133 = arith.mulf %121, %132 : vector<8x128xf32>
      %134 = arith.addf %130, %133 : vector<8x128xf32>
      %135 = math.tanh %134 : vector<8x128xf32>
      %cst_41 = arith.constant 1.000000e+00 : f32
      %136 = vector.broadcast %cst_41 : f32 to vector<8x128xf32>
      %137 = arith.subf %136, %129 : vector<8x128xf32>
      %138 = arith.mulf %137, %135 : vector<8x128xf32>
      %139 = arith.mulf %129, %105 : vector<8x128xf32>
      %140 = arith.addf %138, %139 : vector<8x128xf32>
      %141 = arith.addi %22, %c2_i32 : i32
      %142 = vector.broadcast %141 : i32 to vector<8x1xi32>
      %143 = arith.cmpi sgt, %21, %142 : vector<8x1xi32>
      %144 = vector.shape_cast %143 : vector<8x1xi1> to vector<8x1xi1>
      %145 = vector.broadcast %144 : vector<8x1xi1> to vector<8x128xi1>
      %146 = arith.select %145, %140, %105 : vector<8x128xi1>, vector<8x128xf32>
      %c3_i32 = arith.constant 3 : i32
      %c8_i32_42 = arith.constant 8 : i32
      %147 = arith.muli %c3_i32, %c8_i32_42 : i32
      %148 = tpu.assume_multiple %147, 8 : i32
      %c0_i32_43 = arith.constant 0 : i32
      %c0_i32_44 = arith.constant 0 : i32
      %149 = tpu.memref_slice %arg11[%16, %c0_i32_43, %c0_i32_44] : memref<2x64x384xf32, #tpu.memory_space<vmem>> -> memref<1x64x384xf32, #tpu.memory_space<vmem>>
      %150 = tpu.memref_squeeze %149 : memref<1x64x384xf32, #tpu.memory_space<vmem>> -> memref<64x384xf32, #tpu.memory_space<vmem>>
      %151 = arith.index_cast %148 : i32 to index
      %c0_45 = arith.constant 0 : index
      %152 = vector.load %150[%151, %c0_45] : memref<64x384xf32, #tpu.memory_space<vmem>>, vector<8x384xf32>
      %153 = arith.truncf %146 : vector<8x128xf32> to vector<8x128xbf16>
      %cst_46 = arith.constant dense<0.000000e+00> : vector<8x384xf32>
      %154 = tpu.matmul %153, %17, %cst_46 {dimension_numbers = #tpu.dot_dimension_numbers<[1], [0], [0], [1], [0, 0, 1, 1], [], []>} : vector<8x128xbf16>, vector<128x384xbf16>, vector<8x384xf32> -> vector<8x384xf32>
      %155 = vector.extract_strided_slice %152 {offsets = [0, 0], sizes = [8, 128], strides = [1, 1]} : vector<8x384xf32> to vector<8x128xf32>
      %156 = vector.extract_strided_slice %154 {offsets = [0, 0], sizes = [8, 128], strides = [1, 1]} : vector<8x384xf32> to vector<8x128xf32>
      %157 = arith.addf %155, %156 : vector<8x128xf32>
      %158 = arith.negf %157 : vector<8x128xf32>
      %159 = math.exp %158 : vector<8x128xf32>
      %cst_47 = arith.constant 1.000000e+00 : f32
      %160 = vector.broadcast %cst_47 : f32 to vector<8x128xf32>
      %161 = arith.addf %160, %159 : vector<8x128xf32>
      %162 = arith.divf %160, %161 : vector<8x128xf32>
      %163 = vector.extract_strided_slice %152 {offsets = [0, 128], sizes = [8, 128], strides = [1, 1]} : vector<8x384xf32> to vector<8x128xf32>
      %164 = vector.extract_strided_slice %154 {offsets = [0, 128], sizes = [8, 128], strides = [1, 1]} : vector<8x384xf32> to vector<8x128xf32>
      %165 = arith.addf %163, %164 : vector<8x128xf32>
      %166 = arith.negf %165 : vector<8x128xf32>
      %167 = math.exp %166 : vector<8x128xf32>
      %cst_48 = arith.constant 1.000000e+00 : f32
      %168 = vector.broadcast %cst_48 : f32 to vector<8x128xf32>
      %169 = arith.addf %168, %167 : vector<8x128xf32>
      %170 = arith.divf %168, %169 : vector<8x128xf32>
      %171 = vector.extract_strided_slice %152 {offsets = [0, 256], sizes = [8, 128], strides = [1, 1]} : vector<8x384xf32> to vector<8x128xf32>
      %172 = vector.extract_strided_slice %154 {offsets = [0, 256], sizes = [8, 128], strides = [1, 1]} : vector<8x384xf32> to vector<8x128xf32>
      %173 = arith.addf %172, %20 : vector<8x128xf32>
      %174 = arith.mulf %162, %173 : vector<8x128xf32>
      %175 = arith.addf %171, %174 : vector<8x128xf32>
      %176 = math.tanh %175 : vector<8x128xf32>
      %cst_49 = arith.constant 1.000000e+00 : f32
      %177 = vector.broadcast %cst_49 : f32 to vector<8x128xf32>
      %178 = arith.subf %177, %170 : vector<8x128xf32>
      %179 = arith.mulf %178, %176 : vector<8x128xf32>
      %180 = arith.mulf %170, %146 : vector<8x128xf32>
      %181 = arith.addf %179, %180 : vector<8x128xf32>
      %182 = arith.addi %22, %c3_i32 : i32
      %183 = vector.broadcast %182 : i32 to vector<8x1xi32>
      %184 = arith.cmpi sgt, %21, %183 : vector<8x1xi32>
      %185 = vector.shape_cast %184 : vector<8x1xi1> to vector<8x1xi1>
      %186 = vector.broadcast %185 : vector<8x1xi1> to vector<8x128xi1>
      %187 = arith.select %186, %181, %146 : vector<8x128xi1>, vector<8x128xf32>
      %c4_i32 = arith.constant 4 : i32
      %c8_i32_50 = arith.constant 8 : i32
      %188 = arith.muli %c4_i32, %c8_i32_50 : i32
      %189 = tpu.assume_multiple %188, 8 : i32
      %c0_i32_51 = arith.constant 0 : i32
      %c0_i32_52 = arith.constant 0 : i32
      %190 = tpu.memref_slice %arg11[%16, %c0_i32_51, %c0_i32_52] : memref<2x64x384xf32, #tpu.memory_space<vmem>> -> memref<1x64x384xf32, #tpu.memory_space<vmem>>
      %191 = tpu.memref_squeeze %190 : memref<1x64x384xf32, #tpu.memory_space<vmem>> -> memref<64x384xf32, #tpu.memory_space<vmem>>
      %192 = arith.index_cast %189 : i32 to index
      %c0_53 = arith.constant 0 : index
      %193 = vector.load %191[%192, %c0_53] : memref<64x384xf32, #tpu.memory_space<vmem>>, vector<8x384xf32>
      %194 = arith.truncf %187 : vector<8x128xf32> to vector<8x128xbf16>
      %cst_54 = arith.constant dense<0.000000e+00> : vector<8x384xf32>
      %195 = tpu.matmul %194, %17, %cst_54 {dimension_numbers = #tpu.dot_dimension_numbers<[1], [0], [0], [1], [0, 0, 1, 1], [], []>} : vector<8x128xbf16>, vector<128x384xbf16>, vector<8x384xf32> -> vector<8x384xf32>
      %196 = vector.extract_strided_slice %193 {offsets = [0, 0], sizes = [8, 128], strides = [1, 1]} : vector<8x384xf32> to vector<8x128xf32>
      %197 = vector.extract_strided_slice %195 {offsets = [0, 0], sizes = [8, 128], strides = [1, 1]} : vector<8x384xf32> to vector<8x128xf32>
      %198 = arith.addf %196, %197 : vector<8x128xf32>
      %199 = arith.negf %198 : vector<8x128xf32>
      %200 = math.exp %199 : vector<8x128xf32>
      %cst_55 = arith.constant 1.000000e+00 : f32
      %201 = vector.broadcast %cst_55 : f32 to vector<8x128xf32>
      %202 = arith.addf %201, %200 : vector<8x128xf32>
      %203 = arith.divf %201, %202 : vector<8x128xf32>
      %204 = vector.extract_strided_slice %193 {offsets = [0, 128], sizes = [8, 128], strides = [1, 1]} : vector<8x384xf32> to vector<8x128xf32>
      %205 = vector.extract_strided_slice %195 {offsets = [0, 128], sizes = [8, 128], strides = [1, 1]} : vector<8x384xf32> to vector<8x128xf32>
      %206 = arith.addf %204, %205 : vector<8x128xf32>
      %207 = arith.negf %206 : vector<8x128xf32>
      %208 = math.exp %207 : vector<8x128xf32>
      %cst_56 = arith.constant 1.000000e+00 : f32
      %209 = vector.broadcast %cst_56 : f32 to vector<8x128xf32>
      %210 = arith.addf %209, %208 : vector<8x128xf32>
      %211 = arith.divf %209, %210 : vector<8x128xf32>
      %212 = vector.extract_strided_slice %193 {offsets = [0, 256], sizes = [8, 128], strides = [1, 1]} : vector<8x384xf32> to vector<8x128xf32>
      %213 = vector.extract_strided_slice %195 {offsets = [0, 256], sizes = [8, 128], strides = [1, 1]} : vector<8x384xf32> to vector<8x128xf32>
      %214 = arith.addf %213, %20 : vector<8x128xf32>
      %215 = arith.mulf %203, %214 : vector<8x128xf32>
      %216 = arith.addf %212, %215 : vector<8x128xf32>
      %217 = math.tanh %216 : vector<8x128xf32>
      %cst_57 = arith.constant 1.000000e+00 : f32
      %218 = vector.broadcast %cst_57 : f32 to vector<8x128xf32>
      %219 = arith.subf %218, %211 : vector<8x128xf32>
      %220 = arith.mulf %219, %217 : vector<8x128xf32>
      %221 = arith.mulf %211, %187 : vector<8x128xf32>
      %222 = arith.addf %220, %221 : vector<8x128xf32>
      %223 = arith.addi %22, %c4_i32 : i32
      %224 = vector.broadcast %223 : i32 to vector<8x1xi32>
      %225 = arith.cmpi sgt, %21, %224 : vector<8x1xi32>
      %226 = vector.shape_cast %225 : vector<8x1xi1> to vector<8x1xi1>
      %227 = vector.broadcast %226 : vector<8x1xi1> to vector<8x128xi1>
      %228 = arith.select %227, %222, %187 : vector<8x128xi1>, vector<8x128xf32>
      %c5_i32 = arith.constant 5 : i32
      %c8_i32_58 = arith.constant 8 : i32
      %229 = arith.muli %c5_i32, %c8_i32_58 : i32
      %230 = tpu.assume_multiple %229, 8 : i32
      %c0_i32_59 = arith.constant 0 : i32
      %c0_i32_60 = arith.constant 0 : i32
      %231 = tpu.memref_slice %arg11[%16, %c0_i32_59, %c0_i32_60] : memref<2x64x384xf32, #tpu.memory_space<vmem>> -> memref<1x64x384xf32, #tpu.memory_space<vmem>>
      %232 = tpu.memref_squeeze %231 : memref<1x64x384xf32, #tpu.memory_space<vmem>> -> memref<64x384xf32, #tpu.memory_space<vmem>>
      %233 = arith.index_cast %230 : i32 to index
      %c0_61 = arith.constant 0 : index
      %234 = vector.load %232[%233, %c0_61] : memref<64x384xf32, #tpu.memory_space<vmem>>, vector<8x384xf32>
      %235 = arith.truncf %228 : vector<8x128xf32> to vector<8x128xbf16>
      %cst_62 = arith.constant dense<0.000000e+00> : vector<8x384xf32>
      %236 = tpu.matmul %235, %17, %cst_62 {dimension_numbers = #tpu.dot_dimension_numbers<[1], [0], [0], [1], [0, 0, 1, 1], [], []>} : vector<8x128xbf16>, vector<128x384xbf16>, vector<8x384xf32> -> vector<8x384xf32>
      %237 = vector.extract_strided_slice %234 {offsets = [0, 0], sizes = [8, 128], strides = [1, 1]} : vector<8x384xf32> to vector<8x128xf32>
      %238 = vector.extract_strided_slice %236 {offsets = [0, 0], sizes = [8, 128], strides = [1, 1]} : vector<8x384xf32> to vector<8x128xf32>
      %239 = arith.addf %237, %238 : vector<8x128xf32>
      %240 = arith.negf %239 : vector<8x128xf32>
      %241 = math.exp %240 : vector<8x128xf32>
      %cst_63 = arith.constant 1.000000e+00 : f32
      %242 = vector.broadcast %cst_63 : f32 to vector<8x128xf32>
      %243 = arith.addf %242, %241 : vector<8x128xf32>
      %244 = arith.divf %242, %243 : vector<8x128xf32>
      %245 = vector.extract_strided_slice %234 {offsets = [0, 128], sizes = [8, 128], strides = [1, 1]} : vector<8x384xf32> to vector<8x128xf32>
      %246 = vector.extract_strided_slice %236 {offsets = [0, 128], sizes = [8, 128], strides = [1, 1]} : vector<8x384xf32> to vector<8x128xf32>
      %247 = arith.addf %245, %246 : vector<8x128xf32>
      %248 = arith.negf %247 : vector<8x128xf32>
      %249 = math.exp %248 : vector<8x128xf32>
      %cst_64 = arith.constant 1.000000e+00 : f32
      %250 = vector.broadcast %cst_64 : f32 to vector<8x128xf32>
      %251 = arith.addf %250, %249 : vector<8x128xf32>
      %252 = arith.divf %250, %251 : vector<8x128xf32>
      %253 = vector.extract_strided_slice %234 {offsets = [0, 256], sizes = [8, 128], strides = [1, 1]} : vector<8x384xf32> to vector<8x128xf32>
      %254 = vector.extract_strided_slice %236 {offsets = [0, 256], sizes = [8, 128], strides = [1, 1]} : vector<8x384xf32> to vector<8x128xf32>
      %255 = arith.addf %254, %20 : vector<8x128xf32>
      %256 = arith.mulf %244, %255 : vector<8x128xf32>
      %257 = arith.addf %253, %256 : vector<8x128xf32>
      %258 = math.tanh %257 : vector<8x128xf32>
      %cst_65 = arith.constant 1.000000e+00 : f32
      %259 = vector.broadcast %cst_65 : f32 to vector<8x128xf32>
      %260 = arith.subf %259, %252 : vector<8x128xf32>
      %261 = arith.mulf %260, %258 : vector<8x128xf32>
      %262 = arith.mulf %252, %228 : vector<8x128xf32>
      %263 = arith.addf %261, %262 : vector<8x128xf32>
      %264 = arith.addi %22, %c5_i32 : i32
      %265 = vector.broadcast %264 : i32 to vector<8x1xi32>
      %266 = arith.cmpi sgt, %21, %265 : vector<8x1xi32>
      %267 = vector.shape_cast %266 : vector<8x1xi1> to vector<8x1xi1>
      %268 = vector.broadcast %267 : vector<8x1xi1> to vector<8x128xi1>
      %269 = arith.select %268, %263, %228 : vector<8x128xi1>, vector<8x128xf32>
      %c6_i32 = arith.constant 6 : i32
      %c8_i32_66 = arith.constant 8 : i32
      %270 = arith.muli %c6_i32, %c8_i32_66 : i32
      %271 = tpu.assume_multiple %270, 8 : i32
      %c0_i32_67 = arith.constant 0 : i32
      %c0_i32_68 = arith.constant 0 : i32
      %272 = tpu.memref_slice %arg11[%16, %c0_i32_67, %c0_i32_68] : memref<2x64x384xf32, #tpu.memory_space<vmem>> -> memref<1x64x384xf32, #tpu.memory_space<vmem>>
      %273 = tpu.memref_squeeze %272 : memref<1x64x384xf32, #tpu.memory_space<vmem>> -> memref<64x384xf32, #tpu.memory_space<vmem>>
      %274 = arith.index_cast %271 : i32 to index
      %c0_69 = arith.constant 0 : index
      %275 = vector.load %273[%274, %c0_69] : memref<64x384xf32, #tpu.memory_space<vmem>>, vector<8x384xf32>
      %276 = arith.truncf %269 : vector<8x128xf32> to vector<8x128xbf16>
      %cst_70 = arith.constant dense<0.000000e+00> : vector<8x384xf32>
      %277 = tpu.matmul %276, %17, %cst_70 {dimension_numbers = #tpu.dot_dimension_numbers<[1], [0], [0], [1], [0, 0, 1, 1], [], []>} : vector<8x128xbf16>, vector<128x384xbf16>, vector<8x384xf32> -> vector<8x384xf32>
      %278 = vector.extract_strided_slice %275 {offsets = [0, 0], sizes = [8, 128], strides = [1, 1]} : vector<8x384xf32> to vector<8x128xf32>
      %279 = vector.extract_strided_slice %277 {offsets = [0, 0], sizes = [8, 128], strides = [1, 1]} : vector<8x384xf32> to vector<8x128xf32>
      %280 = arith.addf %278, %279 : vector<8x128xf32>
      %281 = arith.negf %280 : vector<8x128xf32>
      %282 = math.exp %281 : vector<8x128xf32>
      %cst_71 = arith.constant 1.000000e+00 : f32
      %283 = vector.broadcast %cst_71 : f32 to vector<8x128xf32>
      %284 = arith.addf %283, %282 : vector<8x128xf32>
      %285 = arith.divf %283, %284 : vector<8x128xf32>
      %286 = vector.extract_strided_slice %275 {offsets = [0, 128], sizes = [8, 128], strides = [1, 1]} : vector<8x384xf32> to vector<8x128xf32>
      %287 = vector.extract_strided_slice %277 {offsets = [0, 128], sizes = [8, 128], strides = [1, 1]} : vector<8x384xf32> to vector<8x128xf32>
      %288 = arith.addf %286, %287 : vector<8x128xf32>
      %289 = arith.negf %288 : vector<8x128xf32>
      %290 = math.exp %289 : vector<8x128xf32>
      %cst_72 = arith.constant 1.000000e+00 : f32
      %291 = vector.broadcast %cst_72 : f32 to vector<8x128xf32>
      %292 = arith.addf %291, %290 : vector<8x128xf32>
      %293 = arith.divf %291, %292 : vector<8x128xf32>
      %294 = vector.extract_strided_slice %275 {offsets = [0, 256], sizes = [8, 128], strides = [1, 1]} : vector<8x384xf32> to vector<8x128xf32>
      %295 = vector.extract_strided_slice %277 {offsets = [0, 256], sizes = [8, 128], strides = [1, 1]} : vector<8x384xf32> to vector<8x128xf32>
      %296 = arith.addf %295, %20 : vector<8x128xf32>
      %297 = arith.mulf %285, %296 : vector<8x128xf32>
      %298 = arith.addf %294, %297 : vector<8x128xf32>
      %299 = math.tanh %298 : vector<8x128xf32>
      %cst_73 = arith.constant 1.000000e+00 : f32
      %300 = vector.broadcast %cst_73 : f32 to vector<8x128xf32>
      %301 = arith.subf %300, %293 : vector<8x128xf32>
      %302 = arith.mulf %301, %299 : vector<8x128xf32>
      %303 = arith.mulf %293, %269 : vector<8x128xf32>
      %304 = arith.addf %302, %303 : vector<8x128xf32>
      %305 = arith.addi %22, %c6_i32 : i32
      %306 = vector.broadcast %305 : i32 to vector<8x1xi32>
      %307 = arith.cmpi sgt, %21, %306 : vector<8x1xi32>
      %308 = vector.shape_cast %307 : vector<8x1xi1> to vector<8x1xi1>
      %309 = vector.broadcast %308 : vector<8x1xi1> to vector<8x128xi1>
      %310 = arith.select %309, %304, %269 : vector<8x128xi1>, vector<8x128xf32>
      %c7_i32 = arith.constant 7 : i32
      %c8_i32_74 = arith.constant 8 : i32
      %311 = arith.muli %c7_i32, %c8_i32_74 : i32
      %312 = tpu.assume_multiple %311, 8 : i32
      %c0_i32_75 = arith.constant 0 : i32
      %c0_i32_76 = arith.constant 0 : i32
      %313 = tpu.memref_slice %arg11[%16, %c0_i32_75, %c0_i32_76] : memref<2x64x384xf32, #tpu.memory_space<vmem>> -> memref<1x64x384xf32, #tpu.memory_space<vmem>>
      %314 = tpu.memref_squeeze %313 : memref<1x64x384xf32, #tpu.memory_space<vmem>> -> memref<64x384xf32, #tpu.memory_space<vmem>>
      %315 = arith.index_cast %312 : i32 to index
      %c0_77 = arith.constant 0 : index
      %316 = vector.load %314[%315, %c0_77] : memref<64x384xf32, #tpu.memory_space<vmem>>, vector<8x384xf32>
      %317 = arith.truncf %310 : vector<8x128xf32> to vector<8x128xbf16>
      %cst_78 = arith.constant dense<0.000000e+00> : vector<8x384xf32>
      %318 = tpu.matmul %317, %17, %cst_78 {dimension_numbers = #tpu.dot_dimension_numbers<[1], [0], [0], [1], [0, 0, 1, 1], [], []>} : vector<8x128xbf16>, vector<128x384xbf16>, vector<8x384xf32> -> vector<8x384xf32>
      %319 = vector.extract_strided_slice %316 {offsets = [0, 0], sizes = [8, 128], strides = [1, 1]} : vector<8x384xf32> to vector<8x128xf32>
      %320 = vector.extract_strided_slice %318 {offsets = [0, 0], sizes = [8, 128], strides = [1, 1]} : vector<8x384xf32> to vector<8x128xf32>
      %321 = arith.addf %319, %320 : vector<8x128xf32>
      %322 = arith.negf %321 : vector<8x128xf32>
      %323 = math.exp %322 : vector<8x128xf32>
      %cst_79 = arith.constant 1.000000e+00 : f32
      %324 = vector.broadcast %cst_79 : f32 to vector<8x128xf32>
      %325 = arith.addf %324, %323 : vector<8x128xf32>
      %326 = arith.divf %324, %325 : vector<8x128xf32>
      %327 = vector.extract_strided_slice %316 {offsets = [0, 128], sizes = [8, 128], strides = [1, 1]} : vector<8x384xf32> to vector<8x128xf32>
      %328 = vector.extract_strided_slice %318 {offsets = [0, 128], sizes = [8, 128], strides = [1, 1]} : vector<8x384xf32> to vector<8x128xf32>
      %329 = arith.addf %327, %328 : vector<8x128xf32>
      %330 = arith.negf %329 : vector<8x128xf32>
      %331 = math.exp %330 : vector<8x128xf32>
      %cst_80 = arith.constant 1.000000e+00 : f32
      %332 = vector.broadcast %cst_80 : f32 to vector<8x128xf32>
      %333 = arith.addf %332, %331 : vector<8x128xf32>
      %334 = arith.divf %332, %333 : vector<8x128xf32>
      %335 = vector.extract_strided_slice %316 {offsets = [0, 256], sizes = [8, 128], strides = [1, 1]} : vector<8x384xf32> to vector<8x128xf32>
      %336 = vector.extract_strided_slice %318 {offsets = [0, 256], sizes = [8, 128], strides = [1, 1]} : vector<8x384xf32> to vector<8x128xf32>
      %337 = arith.addf %336, %20 : vector<8x128xf32>
      %338 = arith.mulf %326, %337 : vector<8x128xf32>
      %339 = arith.addf %335, %338 : vector<8x128xf32>
      %340 = math.tanh %339 : vector<8x128xf32>
      %cst_81 = arith.constant 1.000000e+00 : f32
      %341 = vector.broadcast %cst_81 : f32 to vector<8x128xf32>
      %342 = arith.subf %341, %334 : vector<8x128xf32>
      %343 = arith.mulf %342, %340 : vector<8x128xf32>
      %344 = arith.mulf %334, %310 : vector<8x128xf32>
      %345 = arith.addf %343, %344 : vector<8x128xf32>
      %346 = arith.addi %22, %c7_i32 : i32
      %347 = vector.broadcast %346 : i32 to vector<8x1xi32>
      %348 = arith.cmpi sgt, %21, %347 : vector<8x1xi32>
      %349 = vector.shape_cast %348 : vector<8x1xi1> to vector<8x1xi1>
      %350 = vector.broadcast %349 : vector<8x1xi1> to vector<8x128xi1>
      %351 = arith.select %350, %345, %310 : vector<8x128xi1>, vector<8x128xf32>
      %c8_i32_82 = arith.constant 8 : i32
      %c0_83 = arith.constant 0 : index
      %c0_84 = arith.constant 0 : index
      %352 = vector.load %arg10[%c0_83, %c0_84] : memref<8x128xf32, #tpu.memory_space<vmem>>, vector<8x128xf32>
      tpu.vector_store %arg10[%c0_83, %c0_84], %351 {strides = array<i32>} : memref<8x128xf32, #tpu.memory_space<vmem>>, vector<8x128xf32>,
    } else {
    }
    %c1_i32_6 = arith.constant 1 : i32
    %12 = arith.cmpi eq, %arg0, %c1_i32_6 : i32
    %13 = arith.extui %12 : i1 to i32
    %c0_i32_7 = arith.constant 0 : i32
    %14 = arith.cmpi ne, %13, %c0_i32_7 : i32
    scf.if %14 {
      tpu.wait_dma2 semaphore(%arg13 : memref<!tpu.dma_semaphore, #tpu.memory_space<semaphore_mem>>) src(%arg8 : memref<128x128xbf16, #tpu.memory_space<any>>) dst(%arg12 : memref<128x128xbf16, #tpu.memory_space<vmem>>)
      %c0 = arith.constant 0 : index
      %c0_8 = arith.constant 0 : index
      %15 = vector.load %arg10[%c0, %c0_8] : memref<8x128xf32, #tpu.memory_space<vmem>>, vector<8x128xf32>
      %16 = arith.truncf %15 : vector<8x128xf32> to vector<8x128xbf16>
      %c0_9 = arith.constant 0 : index
      %c0_10 = arith.constant 0 : index
      %17 = vector.load %arg12[%c0_9, %c0_10] : memref<128x128xbf16, #tpu.memory_space<vmem>>, vector<128x128xbf16>
      %cst = arith.constant dense<0.000000e+00> : vector<8x128xf32>
      %18 = tpu.matmul %16, %17, %cst {dimension_numbers = #tpu.dot_dimension_numbers<[1], [0], [0], [1], [0, 0, 1, 1], [], []>} : vector<8x128xbf16>, vector<128x128xbf16>, vector<8x128xf32> -> vector<8x128xf32>
      %c0_11 = arith.constant 0 : index
      %c0_12 = arith.constant 0 : index
      %19 = vector.load %arg7[%c0_11, %c0_12] : memref<1x128xf32, #tpu.memory_space<vmem>>, vector<1x128xf32>
      %20 = vector.broadcast %19 : vector<1x128xf32> to vector<8x128xf32>
      %21 = arith.addf %18, %20 : vector<8x128xf32>
      %cst_13 = arith.constant dense<0xFF800000> : vector<8xf32>
      %22 = vector.multi_reduction <maximumf>, %21, %cst_13 [1] : vector<8x128xf32> to vector<8xf32>
      %23 = vector.shape_cast %22 : vector<8xf32> to vector<8x1xf32>
      %24 = vector.broadcast %23 : vector<8x1xf32> to vector<8x128xf32>
      %25 = arith.subf %21, %24 : vector<8x128xf32>
      %26 = math.exp %25 : vector<8x128xf32>
      %cst_14 = arith.constant dense<0.000000e+00> : vector<8xf32>
      %27 = vector.multi_reduction <add>, %26, %cst_14 [1] : vector<8x128xf32> to vector<8xf32>
      %28 = vector.shape_cast %27 : vector<8xf32> to vector<8x1xf32>
      %29 = math.log %28 : vector<8x1xf32>
      %30 = arith.addf %29, %23 : vector<8x1xf32>
      %31 = vector.broadcast %30 : vector<8x1xf32> to vector<8x128xf32>
      %32 = arith.subf %21, %31 : vector<8x128xf32>
      %c0_15 = arith.constant 0 : index
      %c0_16 = arith.constant 0 : index
      %33 = vector.load %arg9[%c0_15, %c0_16] : memref<8x128xf32, #tpu.memory_space<vmem>>, vector<8x128xf32>
      tpu.vector_store %arg9[%c0_15, %c0_16], %32 {strides = array<i32>} : memref<8x128xf32, #tpu.memory_space<vmem>>, vector<8x128xf32>,
    } else {
    }
    return
  }
  func.func @transform_0(%arg0: i32) -> (i32, i32) {
    %c0_i32 = arith.constant 0 : i32
    %0 = arith.minsi %arg0, %c0_i32 : i32
    %c0_i32_0 = arith.constant 0 : i32
    %c0_i32_1 = arith.constant 0 : i32
    return %0, %c0_i32_0 : i32, i32
  }
  func.func @transform_1(%arg0: i32) -> (i32, i32) {
    %c0_i32 = arith.constant 0 : i32
    %c0_i32_0 = arith.constant 0 : i32
    %c0_i32_1 = arith.constant 0 : i32
    return %c0_i32, %c0_i32_0 : i32, i32
  }
  func.func @transform_2(%arg0: i32) -> (i32, i32) {
    %c0_i32 = arith.constant 0 : i32
    %c0_i32_0 = arith.constant 0 : i32
    %c0_i32_1 = arith.constant 0 : i32
    return %c0_i32, %c0_i32_0 : i32, i32
  }
  func.func @transform_3(%arg0: i32) -> (i32, i32) {
    %c0_i32 = arith.constant 0 : i32
    %c0_i32_0 = arith.constant 0 : i32
    %c0_i32_1 = arith.constant 0 : i32
    return %c0_i32, %c0_i32_0 : i32, i32
  }
  func.func @transform_4(%arg0: i32) -> (i32, i32) {
    %c0_i32 = arith.constant 0 : i32
    %c0_i32_0 = arith.constant 0 : i32
    %c0_i32_1 = arith.constant 0 : i32
    return %c0_i32, %c0_i32_0 : i32, i32
  }
  func.func @transform_5(%arg0: i32) -> (i32, i32) {
    %c0_i32 = arith.constant 0 : i32
    %c0_i32_0 = arith.constant 0 : i32
    %c0_i32_1 = arith.constant 0 : i32
    return %c0_i32, %c0_i32_0 : i32, i32
  }
  func.func @transform_6(%arg0: i32) -> (i32, i32) {
    %c0_i32 = arith.constant 0 : i32
    %c0_i32_0 = arith.constant 0 : i32
    %c0_i32_1 = arith.constant 0 : i32
    return %c0_i32, %c0_i32_0 : i32, i32
  }
  func.func @transform_8(%arg0: i32) -> (i32, i32) {
    %c0_i32 = arith.constant 0 : i32
    %c0_i32_0 = arith.constant 0 : i32
    %c0_i32_1 = arith.constant 0 : i32
    return %c0_i32, %c0_i32_0 : i32, i32
  }
}

</mosaic_0001>

<bundles_post_ra>
// kernel: tpu_custom_call.1
= control target key start
LH: loop header
LB: loop body
LE: loop exit
PB: predicated region body
PF: predicated region fallthrough
CT: control target
= control target key end

     0   :  { %13 = vsyncpa [#allocation7], 0  ;;  %s3653_s0 = inlined_call_operand.hbm [shape: bf16[64,128], index: 0, kind: input, shape index: {}]   ;;  %s3654_s1 = inlined_call_operand.vmem [shape: s32[8,1], index: 1, kind: input, shape index: {}]   ;;  %s3655_s2 = inlined_call_operand.hbm [shape: bf16[128,384], index: 2, kind: input, shape index: {}]   ;;  %s3656_s3 = inlined_call_operand.hbm [shape: bf16[128,384], index: 3, kind: input, shape index: {}]   ;;  %s3657_s4 = inlined_call_operand.vmem [shape: f32[1,384], index: 4, kind: input, shape index: {}]   ;;  %s3658_s5 = inlined_call_operand.vmem [shape: f32[1,128], index: 5, kind: input, shape index: {}]   ;;  %s3659_s6 = inlined_call_operand.vmem [shape: f32[1,128], index: 6, kind: input, shape index: {}]   ;;  %s3660_s7 = inlined_call_operand.hbm [shape: bf16[128,128], index: 7, kind: input, shape index: {}]   ;;  %s3661_s8 = inlined_call_operand.hbm [shape: f32[8,128], index: 8, kind: output, shape index: {}]  }
   0x1   :  { %15 = vsyncpa [#allocation7 + $0x1], 0 }
   0x2   :  { %16 = vsyncpa [#allocation10], 0 }
   0x3   :  { %17 = vsyncpa [#allocation8], 0  ;;  %s2944_s27 = smov 0   ;;  %s2946_s28 = smov 0  }
   0x4   :  { %s2948_s29 = smov 0   ;;  %s2950_s30 = smov 0  }
   0x5 LB: > { %s2963_s9 = sadd.s32 4294967295, %s2881_s30   ;;  %p47_p0 = scmp.ne.s32.totalorder %s2873_s28, %s2869_s27  ;;  %s2881_s30 = sphi %s2950_s30, %s3681_s30   ;;  %s2877_s29 = sphi %s2948_s29, %s3680_s29   ;;  %s2873_s28 = sphi %s2946_s28, %s3679_s28   ;;  %s2869_s27 = sphi %s2944_s27, %s3678_s27  }
   0x6   : > { %p3662_p1 = scmp.eq.s32.totalorder %s2963_s9, 0  ;;  %p2025_p2 = scmp.ge.s32.totalorder %s2881_s30, 1 }
   0x7   : > { %p205_p3 = scmp.lt.s32.totalorder %s2881_s30, 3  ;;  %s2883_s12 = smov [#allocation9]  }
   0x8   : > { %p2972_p5 = por %p3662_p1, %p47_p0  ;;  %s220_s13 = sshll.u32 %s2883_s12, 4  ;;  %s221_s13 = int_to_ptr.vmem [resolvable:$true] %s220_s13 }
   0x9   : > { %p2976_p6 = pnand %p2025_p2, %p205_p3  ;;  %s2884_s15 = smov [#allocation11]  }
   0xa   : > { %s3665_s10 = scalar_select %p2972_p5, 1, 0 }
   0xb   : > { %s3666_s11 = scalar_select %p2976_p6, 1, 0 }
   0xc   : > { %p2457_p7 = pneg %p2976_p6  ;;  %s233_s16 = sshll.u32 %s2884_s15, 4  ;;  %s2988_s16 = int_to_ptr.vmem [resolvable:$true] %s233_s16 }
   0xd   : > { %s2699_s19 = scalar_lea.hbm %s3655_s2, 3072 }
   0xe   : > { %p2984_p8 = pnand %p2457_p7, %p3662_p1  ;;  %p2700_p9 = scmp.ne.s32.totalorder %s3655_s2, %s2699_s19 }
   0xf   : > { %p2706_p13 = scmp.lt.u32.totalorder %s2699_s19, %s3655_s2 }
  0x10   : > { %p2701_p10 = pneg %p2984_p8 }
  0x12   : > { %p2702_p11 = pnand %p2701_p10, %p2700_p9 }
  0x14   : > { %p2703_p12 = pneg %p2702_p11 }
  0x16   : > { %p2708_p0 = pnand %p2706_p13, %p2703_p12 }
  0x18   : > { %2711 = shalt.err (!%p2708_p0)
}
  0x19   : > { %s2712_s24 = scalar_lea.vmem %s221_s13, 3072  ;;  %p2720_p4 = scmp.lt.s32.totalorder %s221_s13, %s221_s13 }
  0x1a   : > { %p2713_p2 = scmp.ne.s32.totalorder %s221_s13, %s2712_s24  ;;  %p2721_p1 = scmp.lt.s32.totalorder %s2712_s24, %s2712_s24 }
  0x1c   : > { %p2715_p3 = pnand %p2713_p2, %p2701_p10  ;;  %p2722_p5 = por %p2721_p1, %p2720_p4 }
  0x1e   : > { %p2716_p7 = pneg %p2715_p3 }
  0x20   : > { %p2723_p6 = pnand %p2722_p5, %p2716_p7 }
  0x22   : > { %2726 = shalt.err (!%p2723_p6)
}
  0x23   : > { %s2885_s25 = smov 192   ;;  %s2886_s26 = smov 12  }
  0x24   : > { %2460 = dma.hbm_to_vmem [thread:$0]  (!%p2984_p8), %s3655_s2, 3072, %s221_s13, [#allocation10], %s2885_s25, %s2885_s25, %s2886_s26  }
  0x25   : > { %s2727_s18 = scalar_lea.hbm %s3656_s3, 3072 }
  0x26   : > { %p2728_p9 = scmp.ne.s32.totalorder %s3656_s3, %s2727_s18  ;;  %p2734_p5 = scmp.lt.u32.totalorder %s2727_s18, %s3656_s3 }
  0x28   : > { %p2730_p1 = pnand %p2728_p9, %p2701_p10 }
  0x2a   : > { %p2731_p4 = pneg %p2730_p1 }
  0x2c   : > { %p2736_p6 = pnand %p2734_p5, %p2731_p4 }
  0x2e   : > { %2739 = shalt.err (!%p2736_p6)
}
  0x2f   : > { %s2740_s13 = scalar_lea.vmem %s2988_s16, 3072  ;;  %p2748_p0 = scmp.lt.s32.totalorder %s2988_s16, %s2988_s16 }
  0x30   : > { %p2741_p11 = scmp.ne.s32.totalorder %s2988_s16, %s2740_s13  ;;  %p2749_p2 = scmp.lt.s32.totalorder %s2740_s13, %s2740_s13 }
  0x32   : > { %p2743_p12 = pnand %p2741_p11, %p2701_p10  ;;  %p2750_p3 = por %p2749_p2, %p2748_p0 }
  0x34   : > { %p2744_p13 = pneg %p2743_p12 }
  0x36   : > { %p2751_p7 = pnand %p2750_p3, %p2744_p13 }
  0x38   : > { %2754 = shalt.err (!%p2751_p7)
}
  0x39   : > { %2463 = dma.hbm_to_vmem [thread:$0]  (!%p2984_p8), %s3656_s3, 3072, %s2988_s16, [#allocation10], %s2885_s25, %s2885_s25, %s2886_s26  }
  0x3a   : > { %s3038_s27 = sadd.s32 1, %s2881_s30   ;;  %p27_p10 = scmp.lt.s32.totalorder %s2881_s30, 0 }
  0x3b   : > { %p29_p9 = scmp.lt.s32.totalorder %s3038_s27, 0  ;;  %s34_s14 = sadd.s32 1, %s2877_s29 }
  0x3c   : > { %s28_s12 = scalar_select %p27_p10, %s2881_s30, 0 }
  0x3d   : > { %s30_s15 = scalar_select %p29_p9, %s3038_s27, 0 }
  0x3e   : > { %p41_p1 = scmp.ne.s32.totalorder %s2877_s29, %s2873_s28  ;;  %p42_p4 = scmp.eq.s32.totalorder %s2881_s30, 0 }
  0x3f   : > { %s31_s17 = ssub.s32 %s28_s12, %s30_s15  ;;  %p2470_p5 = scmp.lt.s32.totalorder %s2881_s30, 2 }
  0x40   : > { %p32_p6 = scmp.eq.s32.totalorder %s31_s17, 0  ;;  %p43_p11 = por %p42_p4, %p41_p1 }
  0x41   : > { %s256_s18 = sand.u32 1, %s2877_s29   ;;  %s2141_s19 = sshll.u32 %s28_s12, 9 }
  0x42   : > { %s3051_s20 = scalar_select %p32_p6, %s2877_s29, %s34_s14  }
  0x43   : > { %s2029_s16 = sshll.u32 %s256_s18, 5  ;;  %s3056_s21 = scalar_lea.hbm %s3653_s0, %s2141_s19 }
  0x44   : > { %s260_s22 = scalar_lea.vmem [#allocation6], %s2029_s16  ;;  %p3058_p8 = pnand %p2470_p5, %p43_p11 }
  0x45   : > { %s269_s13 = sshll.u32 %s260_s22, 4  ;;  %s3064_s23 = scalar_lea.sflag [#allocation7], %s256_s18  ;;  %s3062_s13 = int_to_ptr.vmem [resolvable:$true] %s269_s13 }
  0x46   : > { %s2755_s24 = scalar_lea.hbm %s3056_s21, 512  ;;  %p2757_p13 = pneg %p3058_p8 }
  0x47   : > { %p2756_p12 = scmp.ne.s32.totalorder %s3056_s21, %s2755_s24  ;;  %s2760_s15 = scalar_lea.hbm %s3653_s0, 512 }
  0x48   : > { %p2761_p3 = scmp.lt.u32.totalorder %s3056_s21, %s3653_s0  ;;  %p2762_p7 = scmp.lt.u32.totalorder %s2760_s15, %s2755_s24 }
  0x49   : > { %p2758_p0 = pnand %p2757_p13, %p2756_p12  ;;  %p2764_p9 = scmp.lt.u32.totalorder %s2755_s24, %s3056_s21 }
  0x4a   : > { %p2763_p10 = por %p2762_p7, %p2761_p3 }
  0x4b   : > { %p2759_p2 = pneg %p2758_p0 }
  0x4c   : > { %p2765_p1 = por %p2764_p9, %p2763_p10 }
  0x4e   : > { %p2766_p4 = pnand %p2765_p1, %p2759_p2 }
  0x50   : > { %2769 = shalt.err (!%p2766_p4)
}
  0x51   : > { %s2770_s18 = scalar_lea.vmem %s3062_s13, 512  ;;  %s2887_s16 = smov [#allocation6]  }
  0x52   : > { %p2771_p5 = scmp.ne.s32.totalorder %s3062_s13, %s2770_s18  ;;  %s2775_s25 = sshll.u32 %s2887_s16, 4  ;;  %s2776_s25 = int_to_ptr.vmem [resolvable:$false] %s2775_s25 }
  0x53   : > { %s2777_s26 = scalar_lea.vmem %s2776_s25, 1024  ;;  %p2778_p12 = scmp.lt.s32.totalorder %s3062_s13, %s2776_s25 }
  0x54   : > { %p2773_p6 = pnand %p2771_p5, %p2757_p13  ;;  %p2779_p0 = scmp.lt.s32.totalorder %s2777_s26, %s2770_s18 }
  0x56   : > { %p2774_p11 = pneg %p2773_p6  ;;  %p2780_p3 = por %p2779_p0, %p2778_p12 }
  0x58   : > { %p2781_p7 = pnand %p2780_p3, %p2774_p11 }
  0x5a   : > { %2784 = shalt.err (!%p2781_p7)
}
  0x5b   : > { %s2888_s22 = smov 64   ;;  %s2889_s24 = smov 4  }
  0x5c   : > { %2467 = dma.hbm_to_vmem [thread:$0]  (!%p3058_p8), %s3056_s21, 512, %s3062_s13, %s3064_s23, %s2888_s22, %s2888_s22, %s2889_s24  }
  0x5d   : > { %p3669_p13 = scmp.ne.s32.totalorder %s3666_s11, 0 }
  0x5e   : > { %s283_s14 = sand.u32 (!%p3669_p13), 1, %s2873_s28   ;;  %p3670_p2 = scmp.ne.s32.totalorder (!%p3669_p13), %s3665_s10, 0 }
  0x5f   : > { %281 = sbr.rel (%p3669_p13) target bundleno = 3141 (0xc45), region = 48  ;;  %s2033_s12 = sshll.u32 (!%p3669_p13), %s283_s14, 5 }
  0x60   : > { %s284_s15 = scalar_lea.sflag (!%p3669_p13), [#allocation7], %s283_s14  ;;  %s3095_s17 = scalar_lea.vmem (!%p3669_p13), [#allocation6], %s2033_s12 }
  0x66   : > { %2854 = dma.done.wait (%p3670_p2), %s284_s15, 512  }
  0x67   : > { %2856 = vsyncadd (%p3670_p2), %s284_s15, 4294966784  ;;  %p3671_p10 = scmp.eq.s32.totalorder %s2963_s9, 0 }
  0x69   : > { %2858 = dma.done.wait (%p3671_p10), [#allocation10], 6144   ;;  %p3672_p8 = pmov %p3671_p10 }
  0x6a   : > { %p3673_p9 = scmp.ne.s32.totalorder %s2963_s9, 0 }
  0x6b   : > { %2860 = vsyncadd (%p3672_p8), [#allocation10], 4294961152  ;;  %v2890_v0 = vmov (!%p3673_p9), 0.0  }
  0x6c   : > { %328 = sbr.rel (%p3673_p9) target bundleno = 115 (0x73), region = 64  ;;  %329 = vst [vmem:[#allocation2] sm:$0xff] (!%p3673_p9), %v2890_v0 }
  0x73 PF: > { %p2037_p1 = scmp.ge.s32.totalorder %s2963_s9, 1 }
  0x74   : > { %v2523_v1 = vld [vmem:[#allocation9 + $0x4] ss:$12 sps:$4 sm:$0xff] (!%p2037_p1)   ;;  %v2525_v2 = vld [vmem:[#allocation9] ss:$12 sps:$4 sm:$0xff] (!%p2037_p1)   ;;  %v2891_v3 = vmov (!%p2037_p1), 0   ;;  %v2558_v29 = vld [vmem:[%s3095_s17 + $0x18] sm:$0xff] (!%p2037_p1)   ;;  %v377_v30 = vlaneseq (!%p2037_p1) }
  0x75   : > { %333 = sbr.rel (%p2037_p1) target bundleno = 391 (0x187), region = 68  ;;  %576 = vmatprep.mubr.bf16.mxu0 (!%p2037_p1), %v2891_v3  ;;  %544 = vmatprep.subr.bf16.mxu0 (!%p2037_p1), %v2523_v1  ;;  %v2526_v4 = vld [vmem:[#allocation9 + $0x1c] ss:$12 sps:$4 sm:$0xff] (!%p2037_p1)   ;;  %v2528_v5 = vld [vmem:[#allocation9 + $0x18] ss:$12 sps:$4 sm:$0xff] (!%p2037_p1)   ;;  %v2557_v28 = vld [vmem:[%s3095_s17 + $0x10] sm:$0xff] (!%p2037_p1)  }
  0x76   : > { %545 = vmatpush1.bf16.msra.mxu0 (!%p2037_p1), %v2525_v2  ;;  %v2529_v6 = vld [vmem:[#allocation9 + $0x34] ss:$12 sps:$4 sm:$0xff] (!%p2037_p1)   ;;  %v2531_v8 = vld [vmem:[#allocation9 + $0x30] ss:$12 sps:$4 sm:$0xff] (!%p2037_p1)   ;;  %v2532_v9 = vld [vmem:[#allocation9 + $0x4c] ss:$12 sps:$4 sm:$0xff] (!%p2037_p1)  }
  0x77   : > { %546 = vmatprep.subr.bf16.mxu0 (!%p2037_p1), %v2526_v4  ;;  %v2535_v7 = vld [vmem:[#allocation9 + $0x8] ss:$12 sps:$4 sm:$0xff] (!%p2037_p1)   ;;  %v2539_v10 = vld [vmem:[#allocation9 + $0x20] ss:$12 sps:$4 sm:$0xff] (!%p2037_p1)   ;;  %v2543_v11 = vld [vmem:[#allocation9 + $0x38] ss:$12 sps:$4 sm:$0xff] (!%p2037_p1)  }
  0x78   : > { %2237 = vmatprep.subr.bf16.mxu1 (!%p2037_p1), %v2535_v7  ;;  %v2534_v12 = vld [vmem:[#allocation9 + $0x48] ss:$12 sps:$4 sm:$0xff] (!%p2037_p1)   ;;  %v2536_v13 = vld [vmem:[#allocation9 + $0x64] ss:$12 sps:$4 sm:$0xff] (!%p2037_p1)   ;;  %v2538_v14 = vld [vmem:[#allocation9 + $0x60] ss:$12 sps:$4 sm:$0xff] (!%p2037_p1)  }
  0x79   : > { %2238 = vmatpush3.bf16.msra.mxu1 (!%p2037_p1), %v2535_v7  ;;  %v2547_v15 = vld [vmem:[#allocation9 + $0x50] ss:$12 sps:$4 sm:$0xff] (!%p2037_p1)   ;;  %v2552_v17 = vld [vmem:[%s3095_s17] sm:$0xff] (!%p2037_p1)   ;;  %v2551_v18 = vld [vmem:[#allocation9 + $0x68] ss:$12 sps:$4 sm:$0xff] (!%p2037_p1)   ;;  %v378_v31 = vshrl.u32 (!%p2037_p1), %v377_v30, 7 }
  0x7a   : > { %547 = vmatpush1.bf16.msra.mxu0 (!%p2037_p1), %v2528_v5  ;;  %2239 = vmatprep.subr.bf16.mxu1 (!%p2037_p1), %v2539_v10  ;;  %v2540_v16 = vld [vmem:[#allocation9 + $0x7c] ss:$12 sps:$4 sm:$0xff] (!%p2037_p1)   ;;  %v2542_v19 = vld [vmem:[#allocation9 + $0x78] ss:$12 sps:$4 sm:$0xff] (!%p2037_p1)   ;;  %v2544_v20 = vld [vmem:[#allocation9 + $0x94] ss:$12 sps:$4 sm:$0xff] (!%p2037_p1)  }
  0x7b   : > { %548 = vmatprep.subr.bf16.mxu0 (!%p2037_p1), %v2529_v6  ;;  %2253 = vmatprep.mubr.bf16.mxu1 (!%p2037_p1), %v2552_v17  ;;  %v2553_v21 = vld [vmem:[#allocation9 + $0x80] ss:$12 sps:$4 sm:$0xff] (!%p2037_p1)   ;;  %v2546_v22 = vld [vmem:[#allocation9 + $0x90] ss:$12 sps:$4 sm:$0xff] (!%p2037_p1)   ;;  %v2554_v24 = vld [vmem:[#allocation9 + $0x98] ss:$12 sps:$4 sm:$0xff] (!%p2037_p1)  }
  0x7c   : > { %v2548_v23 = vld [vmem:[#allocation9 + $0xac] ss:$12 sps:$4 sm:$0xff]   ;;  %v2550_v25 = vld [vmem:[#allocation9 + $0xa8] ss:$12 sps:$4 sm:$0xff]   ;;  %v2556_v26 = vld [vmem:[#allocation9 + $0xb0] ss:$12 sps:$4 sm:$0xff]  }
  0x7d   : > { %2240 = vmatpush3.bf16.msra.mxu1 %v2539_v10  ;;  %v2555_v27 = vld [vmem:[%s3095_s17 + $0x8] sm:$0xff]   ;;  %s334_s10 = sand.u32 1, %s2963_s9  ;;  %v379_v32 = vsub.s32 0, %v378_v31  ;;  %v375_v33 = vld [vmem:[%s3657_s4] sm:$0x7]  ;;  %v383_v34 = vsub.s32 1, %v378_v31 }
  0x7e   : > { %549 = vmatpush1.bf16.msra.mxu0 %v2531_v8  ;;  %2241 = vmatprep.subr.bf16.mxu1 %v2543_v11  ;;  %s2142_s13 = smul.u32 192, %s334_s10  ;;  %v387_v37 = vsub.s32 2, %v378_v31 }
  0x7f   : > { %550 = vmatprep.subr.bf16.mxu0 %v2532_v9  ;;  %v3120_v35 = vrot.slane %v375_v33, %v379_v32  ;;  %v3122_v36 = vrot.slane %v375_v33, %v383_v34 }
  0x80   : > { %s3126_s30 = scalar_lea.vmem [#allocation3], %s2142_s13  ;;  %v388_v45 = vrot.slane %v375_v33, %v387_v37 }
  0x81   : > { %2242 = vmatpush3.bf16.msra.mxu1 %v2543_v11 }
  0x82   : > { %551 = vmatpush1.bf16.msra.mxu0 %v2534_v12  ;;  %2243 = vmatprep.subr.bf16.mxu1 %v2547_v15 }
  0x83   : > { %552 = vmatprep.subr.bf16.mxu0 %v2536_v13 }
  0x85   : > { %2244 = vmatpush3.bf16.msra.mxu1 %v2547_v15 }
  0x86   : > { %553 = vmatpush1.bf16.msra.mxu0 %v2538_v14  ;;  %2245 = vmatprep.subr.bf16.mxu1 %v2551_v18 }
  0x87   : > { %554 = vmatprep.subr.bf16.mxu0 %v2540_v16 }
  0x89   : > { %2246 = vmatpush3.bf16.msra.mxu1 %v2551_v18 }
  0x8a   : > { %555 = vmatpush1.bf16.msra.mxu0 %v2542_v19  ;;  %2247 = vmatprep.subr.bf16.mxu1 %v2553_v21 }
  0x8b   : > { %556 = vmatprep.subr.bf16.mxu0 %v2544_v20 }
  0x8d   : > { %2248 = vmatpush3.bf16.msra.mxu1 %v2553_v21 }
  0x8e   : > { %557 = vmatpush1.bf16.msra.mxu0 %v2546_v22  ;;  %2249 = vmatprep.subr.bf16.mxu1 %v2554_v24 }
  0x8f   : > { %558 = vmatprep.subr.bf16.mxu0 %v2548_v23 }
  0x91   : > { %2250 = vmatpush3.bf16.msra.mxu1 %v2554_v24 }
  0x92   : > { %559 = vmatpush1.bf16.msra.mxu0 %v2550_v25  ;;  %2251 = vmatprep.subr.bf16.mxu1 %v2556_v26 }
  0x95   : > { %577 = vmatmul.mubr.bf16.vlgmr.msra.gmra.mrb[0].mxu0 %v2552_v17  ;;  %2252 = vmatpush3.bf16.msra.mxu1 %v2556_v26 }
  0x96   : > { %586 = vmatprep.mubr.bf16.mxu0 %v2891_v3 }
  0x98   : > { %2254 = vmatmul.mubr.bf16.vlgmr.msra.gmra.mrb[0].mxu1 %v2555_v27 }
  0x99   : > { %2257 = vmatprep.mubr.bf16.mxu1 %v2557_v28 }
  0x9d   : > { %587 = vmatmul.mubr.bf16.gmra.mrb[4].mxu0 %v2555_v27 }
  0x9e   : > { %596 = vmatprep.mubr.bf16.mxu0 %v2891_v3 }
  0xa0   : > { %2258 = vmatmul.mubr.bf16.gmra.mrb[4].mxu1 %v2558_v29 }
  0xa5   : > { %597 = vmatmul.mubr.bf16.gmra.mrb[8].mxu0 %v2557_v28 }
  0xa6   : > { %606 = vmatprep.mubr.bf16.mxu0 %v2891_v3 }
  0xad   : > { %607 = vmatmul.mubr.bf16.gmra.mrb[12].mxu0 %v2558_v29 }
 0x168   : > { %v578_v38 = vpop.f32.mrb[0].mxu0 }
 0x169   : > { %v579_v39 = vadd.f32 %v578_v38, %v3120_v35  ;;  %v580_v40 = vpop.f32.mrb[1].mxu0 }
 0x16a   : > { %v581_v41 = vadd.f32 %v580_v40, %v3122_v36  ;;  %v582_v42 = vpop.f32.mrb[2].mxu0 }
 0x16b   : > { %685 = vst [vmem:[%s3126_s30] sm:$0xff] %v579_v39  ;;  %v583_v43 = vadd.f32 %v582_v42, %v3120_v35  ;;  %v584_v44 = vpop.f32.mrb[3].mxu0  ;;  %v2255_v47 = vpop.f32.mrb[0].mxu1 }
 0x16c   : > { %686 = vst [vmem:[%s3126_s30 + $0x8] sm:$0xff] %v581_v41  ;;  %v585_v46 = vadd.f32 %v584_v44, %v3122_v36  ;;  %v660_v48 = vadd.f32 %v2255_v47, %v388_v45  ;;  %v651_v49 = vpop.f32.mrb[1].mxu1 }
 0x16d   : > { %688 = vst [vmem:[%s3126_s30 + $0x18] sm:$0xff] %v583_v43  ;;  %v652_v51 = vadd.f32 %v651_v49, %v388_v45  ;;  %v2256_v52 = vpop.f32.mrb[2].mxu1 }
 0x16e   : > { %689 = vst [vmem:[%s3126_s30 + $0x20] sm:$0xff] %v585_v46  ;;  %693 = vst [vmem:[%s3126_s30 + $0x40] sm:$0xff] %v660_v48  ;;  %v663_v55 = vadd.f32 %v2256_v52, %v388_v45  ;;  %v654_v56 = vpop.f32.mrb[3].mxu1 }
 0x16f   : > { %687 = vst [vmem:[%s3126_s30 + $0x10] sm:$0xff] %v652_v51  ;;  %v655_v59 = vadd.f32 %v654_v56, %v388_v45 }
 0x170   : > { %v588_v50 = vpop.f32.mrb[4].mxu0  ;;  %696 = vst [vmem:[%s3126_s30 + $0x58] sm:$0xff] %v663_v55 }
 0x171   : > { %v589_v53 = vadd.f32 %v588_v50, %v3120_v35  ;;  %v590_v54 = vpop.f32.mrb[5].mxu0  ;;  %690 = vst [vmem:[%s3126_s30 + $0x28] sm:$0xff] %v655_v59 }
 0x172   : > { %v591_v57 = vadd.f32 %v590_v54, %v3122_v36  ;;  %v592_v58 = vpop.f32.mrb[6].mxu0 }
 0x173   : > { %691 = vst [vmem:[%s3126_s30 + $0x30] sm:$0xff] %v589_v53  ;;  %v593_v60 = vadd.f32 %v592_v58, %v3120_v35  ;;  %v594_v61 = vpop.f32.mrb[7].mxu0  ;;  %v2259_v63 = vpop.f32.mrb[4].mxu1 }
 0x174   : > { %692 = vst [vmem:[%s3126_s30 + $0x38] sm:$0xff] %v591_v57  ;;  %v595_v62 = vadd.f32 %v594_v61, %v3122_v36  ;;  %v676_v0 = vadd.f32 %v2259_v63, %v388_v45  ;;  %v667_v1 = vpop.f32.mrb[5].mxu1 }
 0x175   : > { %694 = vst [vmem:[%s3126_s30 + $0x48] sm:$0xff] %v593_v60  ;;  %v668_v3 = vadd.f32 %v667_v1, %v388_v45  ;;  %v2260_v4 = vpop.f32.mrb[6].mxu1 }
 0x176   : > { %695 = vst [vmem:[%s3126_s30 + $0x50] sm:$0xff] %v595_v62  ;;  %705 = vst [vmem:[%s3126_s30 + $0xa0] sm:$0xff] %v676_v0  ;;  %v679_v7 = vadd.f32 %v2260_v4, %v388_v45  ;;  %v670_v8 = vpop.f32.mrb[7].mxu1 }
 0x177   : > { %699 = vst [vmem:[%s3126_s30 + $0x70] sm:$0xff] %v668_v3  ;;  %v671_v11 = vadd.f32 %v670_v8, %v388_v45 }
 0x178   : > { %v598_v2 = vpop.f32.mrb[8].mxu0  ;;  %708 = vst [vmem:[%s3126_s30 + $0xb8] sm:$0xff] %v679_v7 }
 0x179   : > { %v599_v5 = vadd.f32 %v598_v2, %v3120_v35  ;;  %v600_v6 = vpop.f32.mrb[9].mxu0  ;;  %702 = vst [vmem:[%s3126_s30 + $0x88] sm:$0xff] %v671_v11 }
 0x17a   : > { %v601_v9 = vadd.f32 %v600_v6, %v3122_v36  ;;  %v602_v10 = vpop.f32.mrb[10].mxu0 }
 0x17b   : > { %697 = vst [vmem:[%s3126_s30 + $0x60] sm:$0xff] %v599_v5  ;;  %v603_v12 = vadd.f32 %v602_v10, %v3120_v35  ;;  %v604_v13 = vpop.f32.mrb[11].mxu0 }
 0x17c   : > { %698 = vst [vmem:[%s3126_s30 + $0x68] sm:$0xff] %v601_v9  ;;  %v605_v14 = vadd.f32 %v604_v13, %v3122_v36 }
 0x17d   : > { %700 = vst [vmem:[%s3126_s30 + $0x78] sm:$0xff] %v603_v12 }
 0x17e   : > { %701 = vst [vmem:[%s3126_s30 + $0x80] sm:$0xff] %v605_v14 }
 0x180   : > { %v608_v15 = vpop.f32.mrb[12].mxu0 }
 0x181   : > { %v609_v16 = vadd.f32 %v608_v15, %v3120_v35  ;;  %v610_v17 = vpop.f32.mrb[13].mxu0 }
 0x182   : > { %v611_v18 = vadd.f32 %v610_v17, %v3122_v36  ;;  %v612_v19 = vpop.f32.mrb[14].mxu0 }
 0x183   : > { %703 = vst [vmem:[%s3126_s30 + $0x90] sm:$0xff] %v609_v16  ;;  %v613_v20 = vadd.f32 %v612_v19, %v3120_v35  ;;  %v614_v21 = vpop.f32.mrb[15].mxu0 }
 0x184   : > { %704 = vst [vmem:[%s3126_s30 + $0x98] sm:$0xff] %v611_v18  ;;  %v615_v22 = vadd.f32 %v614_v21, %v3122_v36 }
 0x185   : > { %706 = vst [vmem:[%s3126_s30 + $0xa8] sm:$0xff] %v613_v20 }
 0x186   : > { %707 = vst [vmem:[%s3126_s30 + $0xb0] sm:$0xff] %v615_v22 }
 0x187 PF: > { %s2892_s23 = smov [#allocation4]   ;;  %s2785_s25 = scalar_lea.hbm %s3660_s7, 1024 }
 0x188   : > { %s719_s19 = sshll.u32 %s2892_s23, 4  ;;  %p2786_p4 = scmp.ne.s32.totalorder %s3660_s7, %s2785_s25  ;;  %s720_s19 = int_to_ptr.vmem [resolvable:$true] %s719_s19 }
 0x189   : > { %p3674_p5 = scmp.eq.s32.totalorder %s2963_s9, 0  ;;  %p2791_p12 = scmp.lt.u32.totalorder %s2785_s25, %s3660_s7 }
 0x18b   : > { %p2787_p6 = pnand %p2786_p4, %p3674_p5 }
 0x18d   : > { %p2788_p11 = pneg %p2787_p6 }
 0x18f   : > { %p2793_p0 = pnand %p2791_p12, %p2788_p11 }
 0x191   : > { %2796 = shalt.err (!%p2793_p0)  }
 0x192   : > { %s2797_s12 = scalar_lea.vmem %s720_s19, 1024  ;;  %p3675_p7 = pmov %p3674_p5 }
 0x193   : > { %p2798_p3 = scmp.ne.s32.totalorder %s720_s19, %s2797_s12  ;;  %p2804_p10 = scmp.lt.s32.totalorder %s720_s19, %s720_s19 }
 0x194   : > { %p2805_p8 = scmp.lt.s32.totalorder %s2797_s12, %s2797_s12 }
 0x195   : > { %p2799_p13 = pnand %p2798_p3, %p3675_p7 }
 0x196   : > { %p2806_p9 = por %p2805_p8, %p2804_p10 }
 0x197   : > { %p2800_p2 = pneg %p2799_p13 }
 0x199   : > { %p2807_p1 = pnand %p2806_p9, %p2800_p2 }
 0x19b   : > { %2810 = shalt.err (!%p2807_p1)  }
 0x19c   : > { %p3676_p4 = pmov %p3674_p5  ;;  %p2068_p5 = scmp.le.s32.totalorder %s2963_s9, 0 }
 0x19d   : > { %v3185_v23 = vld [vmem:[#allocation11 + $0x4] ss:$12 sps:$4 sm:$0xff] (!%p2068_p5)   ;;  %v3187_v24 = vld [vmem:[#allocation11] ss:$12 sps:$4 sm:$0xff] (!%p2068_p5)   ;;  %v2893_v25 = vmov (!%p2068_p5), 0.0   ;;  %v2894_v26 = vmov (!%p2068_p5), 0  }
 0x19e   : > { %2452 = dma.hbm_to_vmem [thread:$0]  (%p3676_p4), %s3660_s7, 1024, %s720_s19, [#allocation5]  ;;  %2261 = vmatprep.subr.bf16.mxu1 (!%p2068_p5), %v2893_v25  ;;  %941 = vmatprep.mubr.bf16.mxu0 (!%p2068_p5), %v2894_v26  ;;  %v3192_v27 = vld [vmem:[#allocation11 + $0x1c] ss:$12 sps:$4 sm:$0xff] (!%p2068_p5)   ;;  %vm2895_vm0 = vmmov (!%p2068_p5), 0  }
 0x19f   : > { %726 = sbr.rel (%p2068_p5) target bundleno = 2542 (0x9ee), region = 80  ;;  %909 = vmatprep.subr.bf16.mxu0 (!%p2068_p5), %v3185_v23  ;;  %2277 = vmatprep.mubr.msk.bf16.mxu1 (!%p2068_p5), %vm2895_vm0, %v2893_v25  ;;  %v3197_v28 = vld [vmem:[#allocation11 + $0x18] ss:$12 sps:$4 sm:$0xff] (!%p2068_p5)   ;;  %v3201_v29 = vld [vmem:[#allocation11 + $0x34] ss:$12 sps:$4 sm:$0xff] (!%p2068_p5)   ;;  %s2069_s10 = sadd.s32 (!%p2068_p5), 4294967295, %s2963_s9 }
 0x1a0   : > { %910 = vmatpush1.bf16.msra.mxu0 (!%p2068_p5), %v3187_v24  ;;  %2559 = vset.pattern.permute.xlu0 (!%p2068_p5), %v2894_v26  ;;  %v3205_v30 = vld [vmem:[#allocation11 + $0x30] ss:$12 sps:$4 sm:$0xff] (!%p2068_p5)   ;;  %v3208_v31 = vld [vmem:[#allocation11 + $0x4c] ss:$12 sps:$4 sm:$0xff] (!%p2068_p5)   ;;  %v3211_v32 = vld [vmem:[#allocation11 + $0x8] ss:$12 sps:$4 sm:$0xff] (!%p2068_p5)  }
 0x1a1   : > { %911 = vmatprep.subr.bf16.mxu0 (!%p2068_p5), %v3192_v27  ;;  %2560 = vset.pattern.permute.xlu1 (!%p2068_p5), %v2894_v26  ;;  %v3214_v33 = vld [vmem:[#allocation11 + $0x48] ss:$12 sps:$4 sm:$0xff] (!%p2068_p5)   ;;  %v3218_v34 = vld [vmem:[#allocation11 + $0x64] ss:$12 sps:$4 sm:$0xff] (!%p2068_p5)   ;;  %v3221_v35 = vld [vmem:[#allocation11 + $0x20] ss:$12 sps:$4 sm:$0xff] (!%p2068_p5)  }
 0x1a2   : > { %2262 = vmatpush3.bf16.msra.mxu1 (!%p2068_p5), %v3211_v32  ;;  %s3225_s11 = sshll.u32 (!%p2068_p5), %s2069_s10, 3  ;;  %v3228_v36 = vld [vmem:[#allocation11 + $0x60] ss:$12 sps:$4 sm:$0xff] (!%p2068_p5)   ;;  %v3232_v37 = vld [vmem:[#allocation11 + $0x38] ss:$12 sps:$4 sm:$0xff] (!%p2068_p5)   ;;  %s728_s18 = sand.u32 (!%p2068_p5), 1, %s2069_s10 }
 0x1a3   : > { %2263 = vmatprep.subr.bf16.mxu1 (!%p2068_p5), %v2893_v25  ;;  %s1130_s21 = sadd.s32 (!%p2068_p5), 1, %s3225_s11  ;;  %v3235_v38 = vld [vmem:[#allocation11 + $0x7c] ss:$12 sps:$4 sm:$0xff] (!%p2068_p5)   ;;  %v1012_v39 = vstv (!%p2068_p5), %s3225_s11  ;;  %s1487_s13 = sadd.s32 (!%p2068_p5), 4, %s3225_s11  ;;  %v3241_v41 = vld [vmem:[#allocation11 + $0x78] ss:$12 sps:$4 sm:$0xff] (!%p2068_p5)  }
 0x1a4   : > { %912 = vmatpush1.bf16.msra.mxu0 (!%p2068_p5), %v3197_v28  ;;  %v1131_v40 = vstv (!%p2068_p5), %s1130_s21  ;;  %v3244_v42 = vld [vmem:[#allocation11 + $0x50] ss:$12 sps:$4 sm:$0xff] (!%p2068_p5)   ;;  %v3252_v44 = vld [vmem:[#allocation11 + $0x94] ss:$12 sps:$4 sm:$0xff] (!%p2068_p5)   ;;  %v1488_v46 = vstv (!%p2068_p5), %s1487_s13  ;;  %s1725_s19 = sadd.s32 (!%p2068_p5), 6, %s3225_s11  ;;  %s2143_s16 = smul.u32 (!%p2068_p5), 192, %s728_s18 }
 0x1a5   : > { %913 = vmatprep.subr.bf16.mxu0 (!%p2068_p5), %v3201_v29  ;;  %v3249_v43 = vld [vmem:[%s3654_s1] sm:$0xff] (!%p2068_p5)  ;;  %v3263_v48 = vld [vmem:[#allocation11 + $0x68] ss:$12 sps:$4 sm:$0xff] (!%p2068_p5)   ;;  %v1726_v51 = vstv (!%p2068_p5), %s1725_s19  ;;  %v3277_v54 = vld [vmem:[#allocation11 + $0x80] ss:$12 sps:$4 sm:$0xff] (!%p2068_p5)   ;;  %s1249_s24 = sadd.s32 (!%p2068_p5), 2, %s3225_s11 }
 0x1a6   : > { %2264 = vmatpush3.bf16.msra.mxu1 %v3221_v35  ;;  %vm1013_vm1 = vcmp.gt.s32.totalorder %v3249_v43, %v1012_v39  ;;  %vm1132_vm2 = vcmp.gt.s32.totalorder %v3249_v43, %v1131_v40  ;;  %v3260_v47 = vld [vmem:[#allocation11 + $0x90] ss:$12 sps:$4 sm:$0xff]   ;;  %v3267_v50 = vld [vmem:[#allocation11 + $0xac] ss:$12 sps:$4 sm:$0xff]   ;;  %vm1489_vm3 = vcmp.gt.s32.totalorder %v3249_v43, %v1488_v46  ;;  %v3272_v52 = vld [vmem:[#allocation11 + $0xa8] ss:$12 sps:$4 sm:$0xff]   ;;  %vm1727_vm4 = vcmp.gt.s32.totalorder %v3249_v43, %v1726_v51 }
 0x1a7   : > { %2265 = vmatprep.subr.bf16.mxu1 %v2893_v25  ;;  %v1014_v45 = vsel %vm1013_vm1, 1, %v2894_v26  ;;  %v1133_v49 = vsel %vm1132_vm2, 1, %v2894_v26  ;;  %v3274_v53 = vld [vmem:[#allocation2] sm:$0xff]  ;;  %v1490_v55 = vsel %vm1489_vm3, 1, %v2894_v26  ;;  %v1728_v58 = vsel %vm1727_vm4, 1, %v2894_v26  ;;  %s3335_s25 = scalar_lea.vmem [#allocation3], %s2143_s16 }
 0x1a8   : > { %914 = vmatpush1.bf16.msra.mxu0 %v3205_v30  ;;  %1016 = vperm.xlu0 %2559, %v1014_v45   ;;  %v780_v56 = vpack.c.bf16 %v3274_v53, %v3274_v53  ;;  %v3287_v57 = vld [vmem:[#allocation11 + $0x98] ss:$12 sps:$4 sm:$0xff]   ;;  %v3293_v59 = vld [vmem:[#allocation11 + $0xb0] ss:$12 sps:$4 sm:$0xff]   ;;  %v778_v63 = vld [vmem:[%s3335_s25 + $0x8] sm:$0xff]  ;;  %s1368_s14 = sadd.s32 3, %s3225_s11 }
 0x1a9   : > { %915 = vmatprep.subr.bf16.mxu0 %v3208_v31  ;;  %v777_v60 = vld [vmem:[%s3335_s25] sm:$0xff]  ;;  %v3342_v13 = vld [vmem:[%s3658_s5] ss:$0 sm:$0xff]  ;;  %v779_v17 = vld [vmem:[%s3335_s25 + $0x10] sm:$0xff]  ;;  %s1606_s12 = sadd.s32 5, %s3225_s11  ;;  %s1844_s15 = sadd.s32 7, %s3225_s11 }
 0x1aa   : > { %2266 = vmatpush3.bf16.msra.mxu1 %v3232_v37 }
 0x1ab   : > { %2267 = vmatprep.subr.bf16.mxu1 %v2893_v25 }
 0x1ac   : > { %916 = vmatpush1.bf16.msra.mxu0 %v3214_v33  ;;  %1135 = vperm.xlu0 %2559, %v1133_v49  }
 0x1ad   : > { %917 = vmatprep.subr.bf16.mxu0 %v3218_v34 }
 0x1ae   : > { %2268 = vmatpush3.bf16.msra.mxu1 %v3244_v42 }
 0x1af   : > { %2269 = vmatprep.subr.bf16.mxu1 %v2893_v25 }
 0x1b0   : > { %918 = vmatpush1.bf16.msra.mxu0 %v3228_v36  ;;  %1492 = vperm.xlu0 %2559, %v1490_v55   ;;  %v1369_v55 = vstv %s1368_s14 }
 0x1b1   : > { %919 = vmatprep.subr.bf16.mxu0 %v3235_v38  ;;  %vm1370_vm7 = vcmp.gt.s32.totalorder %v3249_v43, %v1369_v55 }
 0x1b2   : > { %2270 = vmatpush3.bf16.msra.mxu1 %v3263_v48 }
 0x1b3   : > { %2271 = vmatprep.subr.bf16.mxu1 %v2893_v25 }
 0x1b4   : > { %920 = vmatpush1.bf16.msra.mxu0 %v3241_v41  ;;  %1730 = vperm.xlu0 %2559, %v1728_v58   ;;  %v1607_v58 = vstv %s1606_s12 }
 0x1b5   : > { %921 = vmatprep.subr.bf16.mxu0 %v3252_v44  ;;  %vm1608_vm8 = vcmp.gt.s32.totalorder %v3249_v43, %v1607_v58 }
 0x1b6   : > { %2272 = vmatpush3.bf16.msra.mxu1 %v3277_v54 }
 0x1b7   : > { %2273 = vmatprep.subr.bf16.mxu1 %v2893_v25 }
 0x1b8   : > { %922 = vmatpush1.bf16.msra.mxu0 %v3260_v47 }
 0x1b9   : > { %923 = vmatprep.subr.bf16.mxu0 %v3267_v50 }
 0x1ba   : > { %2274 = vmatpush3.bf16.msra.mxu1 %v3287_v57 }
 0x1bb   : > { %2275 = vmatprep.subr.bf16.mxu1 %v2893_v25 }
 0x1bc   : > { %924 = vmatpush1.bf16.msra.mxu0 %v3272_v52 }
 0x1bd   : > { %1027 = vmatprep.subr.bf16.mxu0 %v3185_v23 }
 0x1be   : > { %2276 = vmatpush3.bf16.msra.mxu1 %v3293_v59 }
 0x1bf   : > { %942 = vmatmul.mubr.bf16.vlgmr.msra.gmra.mrb[0].mxu0 %v780_v56  ;;  %2281 = vmatprep.subr.bf16.mxu1 %v2893_v25 }
 0x1c0   : > { %1028 = vmatpush1.bf16.msra.mxu0 %v3187_v24  ;;  %1059 = vmatprep.mubr.bf16.mxu0 %v2894_v26 }
 0x1c1   : > { %1029 = vmatprep.subr.bf16.mxu0 %v3192_v27  ;;  %2278 = vmatmul.mubr.bf16.vlgmr.msra.gmra.mrb[0].mxu1 %v780_v56 }
 0x1c2   : > { %2282 = vmatpush3.bf16.msra.mxu1 %v3211_v32  ;;  %2297 = vmatprep.mubr.msk.bf16.mxu1 %vm2895_vm0, %v2893_v25 }
 0x1c3   : > { %2283 = vmatprep.subr.bf16.mxu1 %v2893_v25 }
 0x1c4   : > { %1030 = vmatpush1.bf16.msra.mxu0 %v3197_v28 }
 0x1c5   : > { %1031 = vmatprep.subr.bf16.mxu0 %v3201_v29 }
 0x1c6   : > { %2284 = vmatpush3.bf16.msra.mxu1 %v3221_v35 }
 0x1c7   : > { %2285 = vmatprep.subr.bf16.mxu1 %v2893_v25 }
 0x1c8   : > { %1032 = vmatpush1.bf16.msra.mxu0 %v3205_v30 }
 0x1c9   : > { %1033 = vmatprep.subr.bf16.mxu0 %v3208_v31 }
 0x1ca   : > { %2286 = vmatpush3.bf16.msra.mxu1 %v3232_v37 }
 0x1cb   : > { %2287 = vmatprep.subr.bf16.mxu1 %v2893_v25 }
 0x1cc   : > { %1034 = vmatpush1.bf16.msra.mxu0 %v3214_v33 }
 0x1cd   : > { %1035 = vmatprep.subr.bf16.mxu0 %v3218_v34 }
 0x1ce   : > { %2288 = vmatpush3.bf16.msra.mxu1 %v3244_v42 }
 0x1cf   : > { %2289 = vmatprep.subr.bf16.mxu1 %v2893_v25 }
 0x1d0   : > { %1036 = vmatpush1.bf16.msra.mxu0 %v3228_v36 }
 0x1d1   : > { %1037 = vmatprep.subr.bf16.mxu0 %v3235_v38 }
 0x1d2   : > { %2290 = vmatpush3.bf16.msra.mxu1 %v3263_v48 }
 0x1d3   : > { %2291 = vmatprep.subr.bf16.mxu1 %v2893_v25 }
 0x1d4   : > { %1038 = vmatpush1.bf16.msra.mxu0 %v3241_v41 }
 0x1d5   : > { %1039 = vmatprep.subr.bf16.mxu0 %v3252_v44 }
 0x1d6   : > { %2292 = vmatpush3.bf16.msra.mxu1 %v3277_v54 }
 0x1d7   : > { %2293 = vmatprep.subr.bf16.mxu1 %v2893_v25 }
 0x1d8   : > { %1040 = vmatpush1.bf16.msra.mxu0 %v3260_v47 }
 0x1d9   : > { %1041 = vmatprep.subr.bf16.mxu0 %v3267_v50 }
 0x1da   : > { %2294 = vmatpush3.bf16.msra.mxu1 %v3287_v57 }
 0x1db   : > { %2295 = vmatprep.subr.bf16.mxu1 %v2893_v25 }
 0x1dc   : > { %1042 = vmatpush1.bf16.msra.mxu0 %v3272_v52 }
 0x1dd   : > { %1146 = vmatprep.subr.bf16.mxu0 %v3185_v23 }
 0x1de   : > { %2296 = vmatpush3.bf16.msra.mxu1 %v3293_v59 }
 0x1df   : > { %2301 = vmatprep.subr.bf16.mxu1 %v2893_v25 }
 0x227   : > { %v1017_v39 = vpop.permute.xlu0 %1016 }
 0x228   : > { %vm1018_vm5 = vcmp.eq.s32.totalorder %v1017_v39, 1 }
 0x292   : > { %v943_v61 = vpop.f32.mrb[0].mxu0 }
 0x293   : > { %v990_v62 = vadd.f32 %v943_v61, %v777_v60  ;;  %v945_v0 = vpop.f32.mrb[1].mxu0  ;;  %v1371_v60 = vsel %vm1370_vm7, 1, %v2894_v26  ;;  %v1845_v61 = vstv %s1844_s15 }
 0x294   : > { %v947_v1 = vpop.f32.mrb[2].mxu0  ;;  %v997_v4 = vadd.f32 %v945_v0, %v778_v63  ;;  %v984_v6 = vpop.f32.mrb[0].mxu1  ;;  %vm1846_vm9 = vcmp.gt.s32.totalorder %v3249_v43, %v1845_v61  ;;  %v2099_v0 = vld [vmem:[%s3335_s25 + $0x18] sm:$0xff] }
 0x295   : > { %v2097_v2 = vmul.f32 -1.442695, %v990_v62  ;;  %v948_v3 = vpop.f32.mrb[3].mxu0  ;;  %v2279_v7 = vpop.f32.mrb[1].mxu1  ;;  %v1004_v15 = vadd.f32 %v3342_v13, %v984_v6  ;;  %v1609_v62 = vsel %vm1608_vm8, 1, %v2894_v26  ;;  %v1847_v63 = vsel %vm1846_vm9, 1, %v2894_v26 }
 0x296   : > { %v2098_v5 = vmul.f32 -1.442695, %v997_v4  ;;  %v987_v8 = vpop.f32.mrb[2].mxu1  ;;  %v2100_v4 = vld [vmem:[%s3335_s25 + $0x20] sm:$0xff] }
 0x297   : > { %2593 = vpow2.f32 %v2097_v2  ;;  %v2280_v9 = vpop.f32.mrb[3].mxu1 }
 0x298   : > { %2595 = vpow2.f32 %v2098_v5 }
 0x2a1   : > { %v2594_v10 = vpop.eup %2593 }
 0x2a2   : > { %v994_v11 = vadd.f32 1.0, %v2594_v10  ;;  %v2596_v12 = vpop.eup %2595 }
 0x2a3   : > { %v1001_v14 = vadd.f32 1.0, %v2596_v12 }
 0x2a4   : > { %2597 = vrcp.f32 %v994_v11 }
 0x2a5   : > { %2599 = vrcp.f32 %v1001_v14 }
 0x2ae   : > { %v2598_v16 = vpop.eup %2597 }
 0x2af   : > { %v1005_v18 = vmul.f32 %v2598_v16, %v1004_v15  ;;  %v2600_v20 = vpop.eup %2599 }
 0x2b0   : > { %v1008_v21 = vsub.f32 1.0, %v2600_v20  ;;  %v1010_v45 = vmul.f32 %v2600_v20, %v3274_v53  ;;  %v2101_v20 = vld [vmem:[%s3335_s25 + $0x28] sm:$0xff] }
 0x2b1   : > { %v1006_v19 = vadd.f32 %v1005_v18, %v779_v17 }
 0x2b3   : > { %2601 = vtanh.f32 %v1006_v19 }
 0x2bd   : > { %v2602_v22 = vpop.eup %2601 }
 0x2be   : > { %v1009_v40 = vmul.f32 %v2602_v22, %v1008_v21 }
 0x2c0   : > { %v1011_v46 = vadd.f32 %v1010_v45, %v1009_v40 }
 0x2c2   : > { %v3348_v49 = vsel %vm1018_vm5, %v1011_v46, %v3274_v53  ;;  %v1250_v53 = vstv %s1249_s24 }
 0x2c3   : > { %v1026_v51 = vpack.c.bf16 %v3348_v49, %v3348_v49  ;;  %vm1251_vm6 = vcmp.gt.s32.totalorder %v3249_v43, %v1250_v53  ;;  %v1136_v53 = vpop.permute.xlu0 %1135 }
 0x2c4   : > { %v1252_v56 = vsel %vm1251_vm6, 1, %v2894_v26  ;;  %vm1137_vm10 = vcmp.eq.s32.totalorder %v1136_v53, 1 }
 0x2c5   : > { %1060 = vmatmul.mubr.bf16.vlgmr.msra.gmra.mrb[4].mxu0 %v1026_v51  ;;  %2298 = vmatmul.mubr.bf16.vlgmr.msra.gmra.mrb[4].mxu1 %v1026_v51 }
 0x2c6   : > { %1147 = vmatpush1.bf16.msra.mxu0 %v3187_v24  ;;  %2302 = vmatpush3.bf16.msra.mxu1 %v3211_v32 }
 0x2c7   : > { %1148 = vmatprep.subr.bf16.mxu0 %v3192_v27  ;;  %2303 = vmatprep.subr.bf16.mxu1 %v2893_v25 }
 0x2c8   : > { %1178 = vmatprep.mubr.bf16.mxu0 %v2894_v26  ;;  %2317 = vmatprep.mubr.msk.bf16.mxu1 %vm2895_vm0, %v2893_v25 }
 0x2c9   : > { %1254 = vperm.xlu1 %2560, %v1252_v56  }
 0x2ca   : > { %1149 = vmatpush1.bf16.msra.mxu0 %v3197_v28  ;;  %2304 = vmatpush3.bf16.msra.mxu1 %v3221_v35 }
 0x2cb   : > { %1150 = vmatprep.subr.bf16.mxu0 %v3201_v29  ;;  %2305 = vmatprep.subr.bf16.mxu1 %v2893_v25 }
 0x2cd   : > { %1373 = vperm.xlu1 %2560, %v1371_v60  }
 0x2ce   : > { %1151 = vmatpush1.bf16.msra.mxu0 %v3205_v30  ;;  %2306 = vmatpush3.bf16.msra.mxu1 %v3232_v37 }
 0x2cf   : > { %1152 = vmatprep.subr.bf16.mxu0 %v3208_v31  ;;  %2307 = vmatprep.subr.bf16.mxu1 %v2893_v25 }
 0x2d1   : > { %1611 = vperm.xlu1 %2560, %v1609_v62  }
 0x2d2   : > { %1153 = vmatpush1.bf16.msra.mxu0 %v3214_v33  ;;  %2308 = vmatpush3.bf16.msra.mxu1 %v3244_v42 }
 0x2d3   : > { %1154 = vmatprep.subr.bf16.mxu0 %v3218_v34  ;;  %2309 = vmatprep.subr.bf16.mxu1 %v2893_v25 }
 0x2d5   : > { %1849 = vperm.xlu1 %2560, %v1847_v63   ;;  %v2105_v63 = vld [vmem:[%s3335_s25 + $0x38] sm:$0xff] }
 0x2d6   : > { %1155 = vmatpush1.bf16.msra.mxu0 %v3228_v36  ;;  %2310 = vmatpush3.bf16.msra.mxu1 %v3263_v48 }
 0x2d7   : > { %1156 = vmatprep.subr.bf16.mxu0 %v3235_v38  ;;  %2311 = vmatprep.subr.bf16.mxu1 %v2893_v25 }
 0x2da   : > { %1157 = vmatpush1.bf16.msra.mxu0 %v3241_v41  ;;  %2312 = vmatpush3.bf16.msra.mxu1 %v3277_v54 }
 0x2db   : > { %1158 = vmatprep.subr.bf16.mxu0 %v3252_v44  ;;  %2313 = vmatprep.subr.bf16.mxu1 %v2893_v25 }
 0x2de   : > { %1159 = vmatpush1.bf16.msra.mxu0 %v3260_v47  ;;  %2314 = vmatpush3.bf16.msra.mxu1 %v3287_v57 }
 0x2df   : > { %1160 = vmatprep.subr.bf16.mxu0 %v3267_v50  ;;  %2315 = vmatprep.subr.bf16.mxu1 %v2893_v25 }
 0x2e2   : > { %1161 = vmatpush1.bf16.msra.mxu0 %v3272_v52  ;;  %2316 = vmatpush3.bf16.msra.mxu1 %v3293_v59 }
 0x2e3   : > { %1265 = vmatprep.subr.bf16.mxu0 %v3185_v23  ;;  %2321 = vmatprep.subr.bf16.mxu1 %v2893_v25 }
 0x398   : > { %v1061_v1 = vpop.f32.mrb[4].mxu0  ;;  %v1102_v2 = vpop.f32.mrb[4].mxu1 }
 0x399   : > { %v1108_v3 = vadd.f32 %v2099_v0, %v1061_v1  ;;  %v1063_v5 = vpop.f32.mrb[5].mxu0  ;;  %v2299_v6 = vpop.f32.mrb[5].mxu1  ;;  %v1122_v18 = vadd.f32 %v3342_v13, %v1102_v2 }
 0x39a   : > { %v1065_v7 = vpop.f32.mrb[6].mxu0  ;;  %v1105_v8 = vpop.f32.mrb[6].mxu1  ;;  %v1115_v12 = vadd.f32 %v2100_v4, %v1063_v5 }
 0x39b   : > { %v2102_v9 = vmul.f32 -1.442695, %v1108_v3  ;;  %v1066_v10 = vpop.f32.mrb[7].mxu0  ;;  %v2300_v11 = vpop.f32.mrb[7].mxu1 }
 0x39c   : > { %v2103_v43 = vmul.f32 -1.442695, %v1115_v12 }
 0x39d   : > { %2603 = vpow2.f32 %v2102_v9 }
 0x39e   : > { %2605 = vpow2.f32 %v2103_v43 }
 0x3a7   : > { %v2604_v14 = vpop.eup %2603 }
 0x3a8   : > { %v1112_v15 = vadd.f32 1.0, %v2604_v14  ;;  %v2606_v16 = vpop.eup %2605 }
 0x3a9   : > { %v1119_v17 = vadd.f32 1.0, %v2606_v16 }
 0x3aa   : > { %2607 = vrcp.f32 %v1112_v15  ;;  %v2106_v15 = vld [vmem:[%s3335_s25 + $0x40] sm:$0xff] }
 0x3ab   : > { %2609 = vrcp.f32 %v1119_v17 }
 0x3b4   : > { %v2608_v19 = vpop.eup %2607 }
 0x3b5   : > { %v1123_v21 = vmul.f32 %v2608_v19, %v1122_v18  ;;  %v2610_v39 = vpop.eup %2609 }
 0x3b6   : > { %v1126_v40 = vsub.f32 1.0, %v2610_v39  ;;  %v1128_v46 = vmul.f32 %v2610_v39, %v3348_v49 }
 0x3b7   : > { %v1124_v22 = vadd.f32 %v2101_v20, %v1123_v21  ;;  %v1255_v21 = vpop.permute.xlu1 %1254 }
 0x3b8   : > { %vm1256_vm11 = vcmp.eq.s32.totalorder %v1255_v21, 1 }
 0x3b9   : > { %2611 = vtanh.f32 %v1124_v22 }
 0x3c3   : > { %v2612_v45 = vpop.eup %2611 }
 0x3c4   : > { %v1127_v51 = vmul.f32 %v2612_v45, %v1126_v40 }
 0x3c6   : > { %v1129_v55 = vadd.f32 %v1128_v46, %v1127_v51  ;;  %v2109_v51 = vld [vmem:[%s3335_s25 + $0x48] sm:$0xff] }
 0x3c8   : > { %v3405_v56 = vsel %vm1137_vm10, %v1129_v55, %v3348_v49  ;;  %v2104_v49 = vld [vmem:[%s3335_s25 + $0x30] sm:$0xff] }
 0x3c9   : > { %v1145_v58 = vpack.c.bf16 %v3405_v56, %v3405_v56 }
 0x3cb   : > { %1179 = vmatmul.mubr.bf16.vlgmr.msra.gmra.mrb[8].mxu0 %v1145_v58  ;;  %2318 = vmatmul.mubr.bf16.vlgmr.msra.gmra.mrb[8].mxu1 %v1145_v58  ;;  %v2110_v58 = vld [vmem:[%s3335_s25 + $0x50] sm:$0xff] }
 0x3cc   : > { %1266 = vmatpush1.bf16.msra.mxu0 %v3187_v24  ;;  %2322 = vmatpush3.bf16.msra.mxu1 %v3211_v32 }
 0x3cd   : > { %1267 = vmatprep.subr.bf16.mxu0 %v3192_v27  ;;  %2323 = vmatprep.subr.bf16.mxu1 %v2893_v25 }
 0x3ce   : > { %1297 = vmatprep.mubr.bf16.mxu0 %v2894_v26  ;;  %2337 = vmatprep.mubr.msk.bf16.mxu1 %vm2895_vm0, %v2893_v25 }
 0x3d0   : > { %1268 = vmatpush1.bf16.msra.mxu0 %v3197_v28  ;;  %2324 = vmatpush3.bf16.msra.mxu1 %v3221_v35 }
 0x3d1   : > { %1269 = vmatprep.subr.bf16.mxu0 %v3201_v29  ;;  %2325 = vmatprep.subr.bf16.mxu1 %v2893_v25 }
 0x3d4   : > { %1270 = vmatpush1.bf16.msra.mxu0 %v3205_v30  ;;  %2326 = vmatpush3.bf16.msra.mxu1 %v3232_v37 }
 0x3d5   : > { %1271 = vmatprep.subr.bf16.mxu0 %v3208_v31  ;;  %2327 = vmatprep.subr.bf16.mxu1 %v2893_v25 }
 0x3d8   : > { %1272 = vmatpush1.bf16.msra.mxu0 %v3214_v33  ;;  %2328 = vmatpush3.bf16.msra.mxu1 %v3244_v42 }
 0x3d9   : > { %1273 = vmatprep.subr.bf16.mxu0 %v3218_v34  ;;  %2329 = vmatprep.subr.bf16.mxu1 %v2893_v25 }
 0x3dc   : > { %1274 = vmatpush1.bf16.msra.mxu0 %v3228_v36  ;;  %2330 = vmatpush3.bf16.msra.mxu1 %v3263_v48 }
 0x3dd   : > { %1275 = vmatprep.subr.bf16.mxu0 %v3235_v38  ;;  %2331 = vmatprep.subr.bf16.mxu1 %v2893_v25 }
 0x3e0   : > { %1276 = vmatpush1.bf16.msra.mxu0 %v3241_v41  ;;  %2332 = vmatpush3.bf16.msra.mxu1 %v3277_v54 }
 0x3e1   : > { %1277 = vmatprep.subr.bf16.mxu0 %v3252_v44  ;;  %2333 = vmatprep.subr.bf16.mxu1 %v2893_v25 }
 0x3e4   : > { %1278 = vmatpush1.bf16.msra.mxu0 %v3260_v47  ;;  %2334 = vmatpush3.bf16.msra.mxu1 %v3287_v57 }
 0x3e5   : > { %1279 = vmatprep.subr.bf16.mxu0 %v3267_v50  ;;  %2335 = vmatprep.subr.bf16.mxu1 %v2893_v25 }
 0x3e8   : > { %1280 = vmatpush1.bf16.msra.mxu0 %v3272_v52  ;;  %2336 = vmatpush3.bf16.msra.mxu1 %v3293_v59 }
 0x3e9   : > { %1384 = vmatprep.subr.bf16.mxu0 %v3185_v23  ;;  %2341 = vmatprep.subr.bf16.mxu1 %v2893_v25 }
 0x49e   : > { %v1180_v60 = vpop.f32.mrb[8].mxu0  ;;  %v1221_v61 = vpop.f32.mrb[8].mxu1 }
 0x49f   : > { %v1227_v62 = vadd.f32 %v2104_v49, %v1180_v60  ;;  %v1182_v0 = vpop.f32.mrb[9].mxu0  ;;  %v2319_v1 = vpop.f32.mrb[9].mxu1  ;;  %v1241_v43 = vadd.f32 %v3342_v13, %v1221_v61 }
 0x4a0   : > { %v1184_v2 = vpop.f32.mrb[10].mxu0  ;;  %v1224_v3 = vpop.f32.mrb[10].mxu1  ;;  %v1234_v7 = vadd.f32 %v2105_v63, %v1182_v0 }
 0x4a1   : > { %v2107_v4 = vmul.f32 -1.442695, %v1227_v62  ;;  %v1185_v5 = vpop.f32.mrb[11].mxu0  ;;  %v2320_v6 = vpop.f32.mrb[11].mxu1 }
 0x4a2   : > { %v2108_v8 = vmul.f32 -1.442695, %v1234_v7 }
 0x4a3   : > { %2613 = vpow2.f32 %v2107_v4 }
 0x4a4   : > { %2615 = vpow2.f32 %v2108_v8 }
 0x4ad   : > { %v2614_v9 = vpop.eup %2613 }
 0x4ae   : > { %v1231_v10 = vadd.f32 1.0, %v2614_v9  ;;  %v2616_v11 = vpop.eup %2615 }
 0x4af   : > { %v1238_v12 = vadd.f32 1.0, %v2616_v11 }
 0x4b0   : > { %2617 = vrcp.f32 %v1231_v10  ;;  %v2111_v10 = vld [vmem:[%s3335_s25 + $0x58] sm:$0xff] }
 0x4b1   : > { %2619 = vrcp.f32 %v1238_v12 }
 0x4ba   : > { %v2618_v14 = vpop.eup %2617 }
 0x4bb   : > { %v1242_v16 = vmul.f32 %v2618_v14, %v1241_v43  ;;  %v2620_v18 = vpop.eup %2619 }
 0x4bc   : > { %v1245_v19 = vsub.f32 1.0, %v2620_v18  ;;  %v1247_v39 = vmul.f32 %v2620_v18, %v3405_v56  ;;  %v1374_v18 = vpop.permute.xlu1 %1373 }
 0x4bd   : > { %v1243_v17 = vadd.f32 %v2106_v15, %v1242_v16  ;;  %vm1375_vm12 = vcmp.eq.s32.totalorder %v1374_v18, 1 }
 0x4bf   : > { %2621 = vtanh.f32 %v1243_v17 }
 0x4c9   : > { %v2622_v20 = vpop.eup %2621 }
 0x4ca   : > { %v1246_v22 = vmul.f32 %v2622_v20, %v1245_v19 }
 0x4cc   : > { %v1248_v40 = vadd.f32 %v1247_v39, %v1246_v22 }
 0x4ce   : > { %v3450_v45 = vsel %vm1256_vm11, %v1248_v40, %v3405_v56 }
 0x4cf   : > { %v1264_v46 = vpack.c.bf16 %v3450_v45, %v3450_v45 }
 0x4d1   : > { %1298 = vmatmul.mubr.bf16.vlgmr.msra.gmra.mrb[12].mxu0 %v1264_v46  ;;  %2338 = vmatmul.mubr.bf16.vlgmr.msra.gmra.mrb[12].mxu1 %v1264_v46 }
 0x4d2   : > { %1385 = vmatpush1.bf16.msra.mxu0 %v3187_v24  ;;  %2342 = vmatpush3.bf16.msra.mxu1 %v3211_v32 }
 0x4d3   : > { %1386 = vmatprep.subr.bf16.mxu0 %v3192_v27  ;;  %2343 = vmatprep.subr.bf16.mxu1 %v2893_v25 }
 0x4d4   : > { %1416 = vmatprep.mubr.bf16.mxu0 %v2894_v26  ;;  %2357 = vmatprep.mubr.msk.bf16.mxu1 %vm2895_vm0, %v2893_v25 }
 0x4d6   : > { %1387 = vmatpush1.bf16.msra.mxu0 %v3197_v28  ;;  %2344 = vmatpush3.bf16.msra.mxu1 %v3221_v35 }
 0x4d7   : > { %1388 = vmatprep.subr.bf16.mxu0 %v3201_v29  ;;  %2345 = vmatprep.subr.bf16.mxu1 %v2893_v25 }
 0x4da   : > { %1389 = vmatpush1.bf16.msra.mxu0 %v3205_v30  ;;  %2346 = vmatpush3.bf16.msra.mxu1 %v3232_v37 }
 0x4db   : > { %1390 = vmatprep.subr.bf16.mxu0 %v3208_v31  ;;  %2347 = vmatprep.subr.bf16.mxu1 %v2893_v25 }
 0x4de   : > { %1391 = vmatpush1.bf16.msra.mxu0 %v3214_v33  ;;  %2348 = vmatpush3.bf16.msra.mxu1 %v3244_v42 }
 0x4df   : > { %1392 = vmatprep.subr.bf16.mxu0 %v3218_v34  ;;  %2349 = vmatprep.subr.bf16.mxu1 %v2893_v25 }
 0x4e2   : > { %1393 = vmatpush1.bf16.msra.mxu0 %v3228_v36  ;;  %2350 = vmatpush3.bf16.msra.mxu1 %v3263_v48 }
 0x4e3   : > { %1394 = vmatprep.subr.bf16.mxu0 %v3235_v38  ;;  %2351 = vmatprep.subr.bf16.mxu1 %v2893_v25 }
 0x4e6   : > { %1395 = vmatpush1.bf16.msra.mxu0 %v3241_v41  ;;  %2352 = vmatpush3.bf16.msra.mxu1 %v3277_v54 }
 0x4e7   : > { %1396 = vmatprep.subr.bf16.mxu0 %v3252_v44  ;;  %2353 = vmatprep.subr.bf16.mxu1 %v2893_v25 }
 0x4ea   : > { %1397 = vmatpush1.bf16.msra.mxu0 %v3260_v47  ;;  %2354 = vmatpush3.bf16.msra.mxu1 %v3287_v57 }
 0x4eb   : > { %1398 = vmatprep.subr.bf16.mxu0 %v3267_v50  ;;  %2355 = vmatprep.subr.bf16.mxu1 %v2893_v25 }
 0x4ee   : > { %1399 = vmatpush1.bf16.msra.mxu0 %v3272_v52  ;;  %2356 = vmatpush3.bf16.msra.mxu1 %v3293_v59 }
 0x4ef   : > { %1503 = vmatprep.subr.bf16.mxu0 %v3185_v23  ;;  %2361 = vmatprep.subr.bf16.mxu1 %v2893_v25 }
 0x5a4   : > { %v1299_v53 = vpop.f32.mrb[12].mxu0  ;;  %v1340_v55 = vpop.f32.mrb[12].mxu1 }
 0x5a5   : > { %v1346_v56 = vadd.f32 %v2109_v51, %v1299_v53  ;;  %v1301_v49 = vpop.f32.mrb[13].mxu0  ;;  %v2339_v60 = vpop.f32.mrb[13].mxu1  ;;  %v1360_v8 = vadd.f32 %v3342_v13, %v1340_v55 }
 0x5a6   : > { %v1303_v61 = vpop.f32.mrb[14].mxu0  ;;  %v1343_v62 = vpop.f32.mrb[14].mxu1  ;;  %v1353_v2 = vadd.f32 %v2110_v58, %v1301_v49 }
 0x5a7   : > { %v2112_v63 = vmul.f32 -1.442695, %v1346_v56  ;;  %v1304_v0 = vpop.f32.mrb[15].mxu0  ;;  %v2340_v1 = vpop.f32.mrb[15].mxu1 }
 0x5a8   : > { %v2113_v3 = vmul.f32 -1.442695, %v1353_v2 }
 0x5a9   : > { %2623 = vpow2.f32 %v2112_v63 }
 0x5aa   : > { %2625 = vpow2.f32 %v2113_v3  ;;  %v2116_v3 = vld [vmem:[%s3335_s25 + $0x70] sm:$0xff] }
 0x5b3   : > { %v2624_v4 = vpop.eup %2623 }
 0x5b4   : > { %v1350_v5 = vadd.f32 1.0, %v2624_v4  ;;  %v2626_v6 = vpop.eup %2625 }
 0x5b5   : > { %v1357_v7 = vadd.f32 1.0, %v2626_v6 }
 0x5b6   : > { %2627 = vrcp.f32 %v1350_v5 }
 0x5b7   : > { %2629 = vrcp.f32 %v1357_v7 }
 0x5c0   : > { %v2628_v9 = vpop.eup %2627 }
 0x5c1   : > { %v1361_v11 = vmul.f32 %v2628_v9, %v1360_v8  ;;  %v2630_v43 = vpop.eup %2629 }
 0x5c2   : > { %v1364_v14 = vsub.f32 1.0, %v2630_v43  ;;  %v1366_v16 = vmul.f32 %v2630_v43, %v3450_v45 }
 0x5c3   : > { %v1362_v12 = vadd.f32 %v2111_v10, %v1361_v11  ;;  %v1493_v11 = vpop.permute.xlu0 %1492 }
 0x5c4   : > { %vm1494_vm13 = vcmp.eq.s32.totalorder %v1493_v11, 1 }
 0x5c5   : > { %2631 = vtanh.f32 %v1362_v12 }
 0x5cf   : > { %v2632_v15 = vpop.eup %2631 }
 0x5d0   : > { %v1365_v17 = vmul.f32 %v2632_v15, %v1364_v14  ;;  %v3544_v15 = vld [vmem:[#allocation11] ss:$12 sps:$4 sm:$0xff]  }
 0x5d2   : > { %v1367_v19 = vadd.f32 %v1366_v16, %v1365_v17  ;;  %v2121_v17 = vld [vmem:[%s3335_s25 + $0x88] sm:$0xff] }
 0x5d4   : > { %v3495_v20 = vsel %vm1375_vm12, %v1367_v19, %v3450_v45  ;;  %v2115_v45 = vld [vmem:[%s3335_s25 + $0x68] sm:$0xff] }
 0x5d5   : > { %v1383_v21 = vpack.c.bf16 %v3495_v20, %v3495_v20 }
 0x5d7   : > { %1417 = vmatmul.mubr.bf16.vlgmr.msra.gmra.mrb[16].mxu0 %v1383_v21  ;;  %2358 = vmatmul.mubr.bf16.vlgmr.msra.gmra.mrb[16].mxu1 %v1383_v21 }
 0x5d8   : > { %1504 = vmatpush1.bf16.msra.mxu0 %v3187_v24  ;;  %2362 = vmatpush3.bf16.msra.mxu1 %v3211_v32  ;;  %v2114_v24 = vld [vmem:[%s3335_s25 + $0x60] sm:$0xff] }
 0x5d9   : > { %1505 = vmatprep.subr.bf16.mxu0 %v3192_v27  ;;  %2363 = vmatprep.subr.bf16.mxu1 %v2893_v25 }
 0x5da   : > { %1535 = vmatprep.mubr.bf16.mxu0 %v2894_v26  ;;  %2377 = vmatprep.mubr.msk.bf16.mxu1 %vm2895_vm0, %v2893_v25 }
 0x5dc   : > { %1506 = vmatpush1.bf16.msra.mxu0 %v3197_v28  ;;  %2364 = vmatpush3.bf16.msra.mxu1 %v3221_v35 }
 0x5dd   : > { %1507 = vmatprep.subr.bf16.mxu0 %v3201_v29  ;;  %2365 = vmatprep.subr.bf16.mxu1 %v2893_v25 }
 0x5e0   : > { %1508 = vmatpush1.bf16.msra.mxu0 %v3205_v30  ;;  %2366 = vmatpush3.bf16.msra.mxu1 %v3232_v37 }
 0x5e1   : > { %1509 = vmatprep.subr.bf16.mxu0 %v3208_v31  ;;  %2367 = vmatprep.subr.bf16.mxu1 %v2893_v25 }
 0x5e4   : > { %1510 = vmatpush1.bf16.msra.mxu0 %v3214_v33  ;;  %2368 = vmatpush3.bf16.msra.mxu1 %v3244_v42 }
 0x5e5   : > { %1511 = vmatprep.subr.bf16.mxu0 %v3218_v34  ;;  %2369 = vmatprep.subr.bf16.mxu1 %v2893_v25 }
 0x5e8   : > { %1512 = vmatpush1.bf16.msra.mxu0 %v3228_v36  ;;  %2370 = vmatpush3.bf16.msra.mxu1 %v3263_v48 }
 0x5e9   : > { %1513 = vmatprep.subr.bf16.mxu0 %v3235_v38  ;;  %2371 = vmatprep.subr.bf16.mxu1 %v2893_v25 }
 0x5ec   : > { %1514 = vmatpush1.bf16.msra.mxu0 %v3241_v41  ;;  %2372 = vmatpush3.bf16.msra.mxu1 %v3277_v54 }
 0x5ed   : > { %1515 = vmatprep.subr.bf16.mxu0 %v3252_v44  ;;  %2373 = vmatprep.subr.bf16.mxu1 %v2893_v25 }
 0x5f0   : > { %1516 = vmatpush1.bf16.msra.mxu0 %v3260_v47  ;;  %2374 = vmatpush3.bf16.msra.mxu1 %v3287_v57 }
 0x5f1   : > { %1517 = vmatprep.subr.bf16.mxu0 %v3267_v50  ;;  %2375 = vmatprep.subr.bf16.mxu1 %v2893_v25 }
 0x5f4   : > { %1518 = vmatpush1.bf16.msra.mxu0 %v3272_v52  ;;  %2376 = vmatpush3.bf16.msra.mxu1 %v3293_v59 }
 0x5f5   : > { %1622 = vmatprep.subr.bf16.mxu0 %v3185_v23  ;;  %2381 = vmatprep.subr.bf16.mxu1 %v2893_v25 }
 0x6aa   : > { %v1418_v22 = vpop.f32.mrb[16].mxu0  ;;  %v1459_v39 = vpop.f32.mrb[16].mxu1 }
 0x6ab   : > { %v1465_v40 = vadd.f32 %v2114_v24, %v1418_v22  ;;  %v1420_v46 = vpop.f32.mrb[17].mxu0  ;;  %v2359_v51 = vpop.f32.mrb[17].mxu1  ;;  %v1479_v1 = vadd.f32 %v3342_v13, %v1459_v39 }
 0x6ac   : > { %v1422_v53 = vpop.f32.mrb[18].mxu0  ;;  %v1462_v55 = vpop.f32.mrb[18].mxu1  ;;  %v1472_v60 = vadd.f32 %v2115_v45, %v1420_v46 }
 0x6ad   : > { %v2117_v56 = vmul.f32 -1.442695, %v1465_v40  ;;  %v1423_v58 = vpop.f32.mrb[19].mxu0  ;;  %v2360_v49 = vpop.f32.mrb[19].mxu1  ;;  %v2675_v53 = vld [vmem:[#allocation11 + $0x8] ss:$12 sps:$4 sm:$0xff]  }
 0x6ae   : > { %v2118_v61 = vmul.f32 -1.442695, %v1472_v60  ;;  %v1612_v40 = vpop.permute.xlu1 %1611  ;;  %v2676_v55 = vld [vmem:[#allocation11 + $0x1c] ss:$12 sps:$4 sm:$0xff]   ;;  %v2678_v58 = vld [vmem:[#allocation11 + $0x20] ss:$12 sps:$4 sm:$0xff]  }
 0x6af   : > { %2633 = vpow2.f32 %v2117_v56  ;;  %vm1613_vm14 = vcmp.eq.s32.totalorder %v1612_v40, 1  ;;  %v2677_v56 = vld [vmem:[#allocation11 + $0x18] ss:$12 sps:$4 sm:$0xff]   ;;  %v2679_v49 = vld [vmem:[#allocation11 + $0x34] ss:$12 sps:$4 sm:$0xff]  }
 0x6b0   : > { %2635 = vpow2.f32 %v2118_v61  ;;  %v2680_v60 = vld [vmem:[#allocation11 + $0x30] ss:$12 sps:$4 sm:$0xff]   ;;  %v2681_v61 = vld [vmem:[#allocation11 + $0x38] ss:$12 sps:$4 sm:$0xff]  }
 0x6b9   : > { %v2634_v23 = vpop.eup %2633 }
 0x6ba   : > { %v1469_v62 = vadd.f32 1.0, %v2634_v23  ;;  %v2636_v63 = vpop.eup %2635  ;;  %v2682_v23 = vld [vmem:[#allocation11 + $0x4c] ss:$12 sps:$4 sm:$0xff]  }
 0x6bb   : > { %v1476_v0 = vadd.f32 1.0, %v2636_v63  ;;  %v2685_v63 = vld [vmem:[#allocation11 + $0x64] ss:$12 sps:$4 sm:$0xff]  }
 0x6bc   : > { %2637 = vrcp.f32 %v1469_v62  ;;  %v2684_v62 = vld [vmem:[#allocation11 + $0x50] ss:$12 sps:$4 sm:$0xff]  }
 0x6bd   : > { %2639 = vrcp.f32 %v1476_v0  ;;  %v2686_v0 = vld [vmem:[#allocation11 + $0x60] ss:$12 sps:$4 sm:$0xff]  }
 0x6c6   : > { %v2638_v2 = vpop.eup %2637 }
 0x6c7   : > { %v1480_v4 = vmul.f32 %v2638_v2, %v1479_v1  ;;  %v2640_v6 = vpop.eup %2639  ;;  %v2687_v1 = vld [vmem:[#allocation11 + $0x68] ss:$12 sps:$4 sm:$0xff]  }
 0x6c8   : > { %v1483_v7 = vsub.f32 1.0, %v2640_v6  ;;  %v1485_v9 = vmul.f32 %v2640_v6, %v3495_v20  ;;  %v2688_v2 = vld [vmem:[#allocation11 + $0x7c] ss:$12 sps:$4 sm:$0xff]  }
 0x6c9   : > { %v1481_v5 = vadd.f32 %v2116_v3, %v1480_v4  ;;  %v2689_v3 = vld [vmem:[#allocation11 + $0x78] ss:$12 sps:$4 sm:$0xff]   ;;  %v2690_v4 = vld [vmem:[#allocation11 + $0x80] ss:$12 sps:$4 sm:$0xff]   ;;  %v2692_v6 = vld [vmem:[#allocation11 + $0x90] ss:$12 sps:$4 sm:$0xff]  }
 0x6cb   : > { %2641 = vtanh.f32 %v1481_v5  ;;  %v2691_v5 = vld [vmem:[#allocation11 + $0x94] ss:$12 sps:$4 sm:$0xff]  }
 0x6d5   : > { %v2642_v8 = vpop.eup %2641 }
 0x6d6   : > { %v1484_v10 = vmul.f32 %v2642_v8, %v1483_v7  ;;  %v2693_v7 = vld [vmem:[#allocation11 + $0xac] ss:$12 sps:$4 sm:$0xff]   ;;  %v2694_v8 = vld [vmem:[#allocation11 + $0xa8] ss:$12 sps:$4 sm:$0xff]  }
 0x6d8   : > { %v1486_v12 = vadd.f32 %v1485_v9, %v1484_v10  ;;  %v2124_v9 = vld [vmem:[%s3335_s25 + $0x90] sm:$0xff] }
 0x6da   : > { %v3540_v43 = vsel %vm1494_vm13, %v1486_v12, %v3495_v20 }
 0x6db   : > { %v1502_v14 = vpack.c.bf16 %v3540_v43, %v3540_v43 }
 0x6dd   : > { %1536 = vmatmul.mubr.bf16.vlgmr.msra.gmra.mrb[20].mxu0 %v1502_v14  ;;  %2378 = vmatmul.mubr.bf16.vlgmr.msra.gmra.mrb[20].mxu1 %v1502_v14 }
 0x6de   : > { %1623 = vmatpush1.bf16.msra.mxu0 %v3544_v15  ;;  %2382 = vmatpush3.bf16.msra.mxu1 %v3211_v32  ;;  %v2120_v32 = vld [vmem:[%s3335_s25 + $0x80] sm:$0xff] }
 0x6df   : > { %1624 = vmatprep.subr.bf16.mxu0 %v3192_v27  ;;  %2383 = vmatprep.subr.bf16.mxu1 %v2893_v25  ;;  %v2674_v27 = vld [vmem:[#allocation11 + $0x4] ss:$12 sps:$4 sm:$0xff]  }
 0x6e0   : > { %1654 = vmatprep.mubr.bf16.mxu0 %v2894_v26  ;;  %2397 = vmatprep.mubr.msk.bf16.mxu1 %vm2895_vm0, %v2893_v25 }
 0x6e2   : > { %1625 = vmatpush1.bf16.msra.mxu0 %v3197_v28  ;;  %2384 = vmatpush3.bf16.msra.mxu1 %v3221_v35  ;;  %v2119_v28 = vld [vmem:[%s3335_s25 + $0x78] sm:$0xff] }
 0x6e3   : > { %1626 = vmatprep.subr.bf16.mxu0 %v3201_v29  ;;  %2385 = vmatprep.subr.bf16.mxu1 %v2893_v25 }
 0x6e6   : > { %1627 = vmatpush1.bf16.msra.mxu0 %v3205_v30  ;;  %2386 = vmatpush3.bf16.msra.mxu1 %v3232_v37 }
 0x6e7   : > { %1628 = vmatprep.subr.bf16.mxu0 %v3208_v31  ;;  %2387 = vmatprep.subr.bf16.mxu1 %v2893_v25 }
 0x6ea   : > { %1629 = vmatpush1.bf16.msra.mxu0 %v3214_v33  ;;  %2388 = vmatpush3.bf16.msra.mxu1 %v3244_v42 }
 0x6eb   : > { %1630 = vmatprep.subr.bf16.mxu0 %v3218_v34  ;;  %2389 = vmatprep.subr.bf16.mxu1 %v2893_v25 }
 0x6ee   : > { %1631 = vmatpush1.bf16.msra.mxu0 %v3228_v36  ;;  %2390 = vmatpush3.bf16.msra.mxu1 %v3263_v48 }
 0x6ef   : > { %1632 = vmatprep.subr.bf16.mxu0 %v3235_v38  ;;  %2391 = vmatprep.subr.bf16.mxu1 %v2893_v25 }
 0x6f2   : > { %1633 = vmatpush1.bf16.msra.mxu0 %v3241_v41  ;;  %2392 = vmatpush3.bf16.msra.mxu1 %v3277_v54 }
 0x6f3   : > { %1634 = vmatprep.subr.bf16.mxu0 %v3252_v44  ;;  %2393 = vmatprep.subr.bf16.mxu1 %v2893_v25 }
 0x6f6   : > { %1635 = vmatpush1.bf16.msra.mxu0 %v3260_v47  ;;  %2394 = vmatpush3.bf16.msra.mxu1 %v3287_v57 }
 0x6f7   : > { %1636 = vmatprep.subr.bf16.mxu0 %v3267_v50  ;;  %2395 = vmatprep.subr.bf16.mxu1 %v2893_v25 }
 0x6fa   : > { %1637 = vmatpush1.bf16.msra.mxu0 %v3272_v52  ;;  %2396 = vmatpush3.bf16.msra.mxu1 %v3293_v59 }
 0x6fb   : > { %1741 = vmatprep.subr.bf16.mxu0 %v2674_v27  ;;  %2401 = vmatprep.subr.bf16.mxu1 %v2893_v25 }
 0x7b0   : > { %v1537_v29 = vpop.f32.mrb[20].mxu0  ;;  %v1578_v30 = vpop.f32.mrb[20].mxu1 }
 0x7b1   : > { %v1584_v31 = vadd.f32 %v2119_v28, %v1537_v29  ;;  %v1539_v33 = vpop.f32.mrb[21].mxu0  ;;  %v2379_v34 = vpop.f32.mrb[21].mxu1  ;;  %v1598_v54 = vadd.f32 %v3342_v13, %v1578_v30 }
 0x7b2   : > { %v1541_v35 = vpop.f32.mrb[22].mxu0  ;;  %v1581_v36 = vpop.f32.mrb[22].mxu1  ;;  %v1591_v42 = vadd.f32 %v2120_v32, %v1539_v33 }
 0x7b3   : > { %v2122_v37 = vmul.f32 -1.442695, %v1584_v31  ;;  %v1542_v38 = vpop.f32.mrb[23].mxu0  ;;  %v2380_v41 = vpop.f32.mrb[23].mxu1 }
 0x7b4   : > { %v2123_v44 = vmul.f32 -1.442695, %v1591_v42 }
 0x7b5   : > { %2643 = vpow2.f32 %v2122_v37  ;;  %v2126_v37 = vld [vmem:[%s3335_s25 + $0xa0] sm:$0xff] }
 0x7b6   : > { %2645 = vpow2.f32 %v2123_v44 }
 0x7bf   : > { %v2644_v47 = vpop.eup %2643 }
 0x7c0   : > { %v1588_v48 = vadd.f32 1.0, %v2644_v47  ;;  %v2646_v50 = vpop.eup %2645 }
 0x7c1   : > { %v1595_v52 = vadd.f32 1.0, %v2646_v50 }
 0x7c2   : > { %2647 = vrcp.f32 %v1588_v48  ;;  %v1731_v48 = vpop.permute.xlu0 %1730 }
 0x7c3   : > { %2649 = vrcp.f32 %v1595_v52  ;;  %vm1732_vm15 = vcmp.eq.s32.totalorder %v1731_v48, 1 }
 0x7cc   : > { %v2648_v16 = vpop.eup %2647 }
 0x7cd   : > { %v1599_v18 = vmul.f32 %v2648_v16, %v1598_v54  ;;  %v2650_v20 = vpop.eup %2649 }
 0x7ce   : > { %v1602_v21 = vsub.f32 1.0, %v2650_v20  ;;  %v1604_v22 = vmul.f32 %v2650_v20, %v3540_v43 }
 0x7cf   : > { %v1600_v19 = vadd.f32 %v2121_v17, %v1599_v18  ;;  %v2129_v18 = vld [vmem:[%s3335_s25 + $0xa8] sm:$0xff] }
 0x7d1   : > { %2651 = vtanh.f32 %v1600_v19 }
 0x7db   : > { %v2652_v24 = vpop.eup %2651 }
 0x7dc   : > { %v1603_v39 = vmul.f32 %v2652_v24, %v1602_v21  ;;  %v2130_v24 = vld [vmem:[%s3335_s25 + $0xb0] sm:$0xff] }
 0x7de   : > { %v1605_v45 = vadd.f32 %v1604_v22, %v1603_v39 }
 0x7e0   : > { %v3586_v46 = vsel %vm1613_vm14, %v1605_v45, %v3540_v43  ;;  %v2125_v43 = vld [vmem:[%s3335_s25 + $0x98] sm:$0xff] }
 0x7e1   : > { %v1621_v51 = vpack.c.bf16 %v3586_v46, %v3586_v46 }
 0x7e3   : > { %1655 = vmatmul.mubr.bf16.vlgmr.msra.gmra.mrb[24].mxu0 %v1621_v51  ;;  %2398 = vmatmul.mubr.bf16.vlgmr.msra.gmra.mrb[24].mxu1 %v1621_v51 }
 0x7e4   : > { %1742 = vmatpush1.bf16.msra.mxu0 %v3544_v15  ;;  %2402 = vmatpush3.bf16.msra.mxu1 %v2675_v53 }
 0x7e5   : > { %1743 = vmatprep.subr.bf16.mxu0 %v2676_v55  ;;  %2403 = vmatprep.subr.bf16.mxu1 %v2893_v25 }
 0x7e6   : > { %1773 = vmatprep.mubr.bf16.mxu0 %v2894_v26  ;;  %2417 = vmatprep.mubr.msk.bf16.mxu1 %vm2895_vm0, %v2893_v25  ;;  %v2683_v26 = vld [vmem:[#allocation11 + $0x48] ss:$12 sps:$4 sm:$0xff]  }
 0x7e8   : > { %1744 = vmatpush1.bf16.msra.mxu0 %v2677_v56  ;;  %2404 = vmatpush3.bf16.msra.mxu1 %v2678_v58 }
 0x7e9   : > { %1745 = vmatprep.subr.bf16.mxu0 %v2679_v49  ;;  %2405 = vmatprep.subr.bf16.mxu1 %v2893_v25 }
 0x7ec   : > { %1746 = vmatpush1.bf16.msra.mxu0 %v2680_v60  ;;  %2406 = vmatpush3.bf16.msra.mxu1 %v2681_v61 }
 0x7ed   : > { %1747 = vmatprep.subr.bf16.mxu0 %v2682_v23  ;;  %2407 = vmatprep.subr.bf16.mxu1 %v2893_v25 }
 0x7f0   : > { %1748 = vmatpush1.bf16.msra.mxu0 %v2683_v26  ;;  %2408 = vmatpush3.bf16.msra.mxu1 %v2684_v62  ;;  %v2131_v62 = vld [vmem:[%s3335_s25 + $0xb8] sm:$0xff] }
 0x7f1   : > { %1749 = vmatprep.subr.bf16.mxu0 %v2685_v63  ;;  %2409 = vmatprep.subr.bf16.mxu1 %v2893_v25 }
 0x7f4   : > { %1750 = vmatpush1.bf16.msra.mxu0 %v2686_v0  ;;  %2410 = vmatpush3.bf16.msra.mxu1 %v2687_v1 }
 0x7f5   : > { %1751 = vmatprep.subr.bf16.mxu0 %v2688_v2  ;;  %2411 = vmatprep.subr.bf16.mxu1 %v2893_v25 }
 0x7f8   : > { %1752 = vmatpush1.bf16.msra.mxu0 %v2689_v3  ;;  %2412 = vmatpush3.bf16.msra.mxu1 %v2690_v4  ;;  %v1850_v4 = vpop.permute.xlu1 %1849 }
 0x7f9   : > { %1753 = vmatprep.subr.bf16.mxu0 %v2691_v5  ;;  %2413 = vmatprep.subr.bf16.mxu1 %v2893_v25  ;;  %vm1851_vm0 = vcmp.eq.s32.totalorder %v1850_v4, 1 }
 0x7fc   : > { %1754 = vmatpush1.bf16.msra.mxu0 %v2692_v6  ;;  %2414 = vmatpush3.bf16.msra.mxu1 %v3287_v57 }
 0x7fd   : > { %1755 = vmatprep.subr.bf16.mxu0 %v2693_v7  ;;  %2415 = vmatprep.subr.bf16.mxu1 %v2893_v25 }
 0x800   : > { %1756 = vmatpush1.bf16.msra.mxu0 %v2694_v8  ;;  %2416 = vmatpush3.bf16.msra.mxu1 %v3293_v59 }
 0x8b6   : > { %v1656_v10 = vpop.f32.mrb[24].mxu0  ;;  %v1697_v11 = vpop.f32.mrb[24].mxu1 }
 0x8b7   : > { %v1703_v12 = vadd.f32 %v2124_v9, %v1656_v10  ;;  %v1658_v14 = vpop.f32.mrb[25].mxu0  ;;  %v2399_v15 = vpop.f32.mrb[25].mxu1  ;;  %v1717_v35 = vadd.f32 %v3342_v13, %v1697_v11 }
 0x8b8   : > { %v1660_v27 = vpop.f32.mrb[26].mxu0  ;;  %v1700_v28 = vpop.f32.mrb[26].mxu1  ;;  %v1710_v31 = vadd.f32 %v2125_v43, %v1658_v14 }
 0x8b9   : > { %v2127_v29 = vmul.f32 -1.442695, %v1703_v12  ;;  %v1661_v57 = vpop.f32.mrb[27].mxu0  ;;  %v2400_v30 = vpop.f32.mrb[27].mxu1 }
 0x8ba   : > { %v2128_v25 = vmul.f32 -1.442695, %v1710_v31 }
 0x8bb   : > { %2653 = vpow2.f32 %v2127_v29 }
 0x8bc   : > { %2655 = vpow2.f32 %v2128_v25 }
 0x8c5   : > { %v2654_v32 = vpop.eup %2653 }
 0x8c6   : > { %v1707_v33 = vadd.f32 1.0, %v2654_v32  ;;  %v2656_v59 = vpop.eup %2655 }
 0x8c7   : > { %v1714_v34 = vadd.f32 1.0, %v2656_v59 }
 0x8c8   : > { %2657 = vrcp.f32 %v1707_v33 }
 0x8c9   : > { %2659 = vrcp.f32 %v1714_v34 }
 0x8d2   : > { %v2658_v36 = vpop.eup %2657 }
 0x8d3   : > { %v1718_v38 = vmul.f32 %v2658_v36, %v1717_v35  ;;  %v2660_v42 = vpop.eup %2659 }
 0x8d4   : > { %v1721_v44 = vsub.f32 1.0, %v2660_v42  ;;  %v1723_v50 = vmul.f32 %v2660_v42, %v3586_v46 }
 0x8d5   : > { %v1719_v41 = vadd.f32 %v2126_v37, %v1718_v38 }
 0x8d7   : > { %2661 = vtanh.f32 %v1719_v41 }
 0x8e1   : > { %v2662_v47 = vpop.eup %2661 }
 0x8e2   : > { %v1722_v52 = vmul.f32 %v2662_v47, %v1721_v44 }
 0x8e4   : > { %v1724_v54 = vadd.f32 %v1723_v50, %v1722_v52 }
 0x8e6   : > { %v1733_v16 = vsel %vm1732_vm15, %v1724_v54, %v3586_v46 }
 0x8e7   : > { %v1740_v17 = vpack.c.bf16 %v1733_v16, %v1733_v16 }
 0x8e9   : > { %1774 = vmatmul.mubr.bf16.vlgmr.msra.gmra.mrb[28].mxu0 %v1740_v17  ;;  %2418 = vmatmul.mubr.bf16.vlgmr.msra.gmra.mrb[28].mxu1 %v1740_v17 }
 0x9bc   : > { %v1775_v19 = vpop.f32.mrb[28].mxu0  ;;  %v1816_v20 = vpop.f32.mrb[28].mxu1 }
 0x9bd   : > { %v1822_v21 = vadd.f32 %v2129_v18, %v1775_v19  ;;  %v1777_v22 = vpop.f32.mrb[29].mxu0  ;;  %v2419_v39 = vpop.f32.mrb[29].mxu1  ;;  %v1836_v23 = vadd.f32 %v3342_v13, %v1816_v20 }
 0x9be   : > { %v1779_v40 = vpop.f32.mrb[30].mxu0  ;;  %v1819_v45 = vpop.f32.mrb[30].mxu1  ;;  %v1829_v56 = vadd.f32 %v2130_v24, %v1777_v22 }
 0x9bf   : > { %v2132_v51 = vmul.f32 -1.442695, %v1822_v21  ;;  %v1780_v53 = vpop.f32.mrb[31].mxu0  ;;  %v2420_v55 = vpop.f32.mrb[31].mxu1 }
 0x9c0   : > { %v2133_v58 = vmul.f32 -1.442695, %v1829_v56 }
 0x9c1   : > { %2663 = vpow2.f32 %v2132_v51 }
 0x9c2   : > { %2665 = vpow2.f32 %v2133_v58 }
 0x9cb   : > { %v2664_v46 = vpop.eup %2663 }
 0x9cc   : > { %v1826_v49 = vadd.f32 1.0, %v2664_v46  ;;  %v2666_v60 = vpop.eup %2665 }
 0x9cd   : > { %v1833_v61 = vadd.f32 1.0, %v2666_v60 }
 0x9ce   : > { %2667 = vrcp.f32 %v1826_v49 }
 0x9cf   : > { %2669 = vrcp.f32 %v1833_v61 }
 0x9d8   : > { %v2668_v26 = vpop.eup %2667 }
 0x9d9   : > { %v1837_v63 = vmul.f32 %v2668_v26, %v1836_v23  ;;  %v2670_v1 = vpop.eup %2669 }
 0x9da   : > { %v1840_v2 = vsub.f32 1.0, %v2670_v1  ;;  %v1842_v6 = vmul.f32 %v2670_v1, %v1733_v16 }
 0x9db   : > { %v1838_v0 = vadd.f32 %v2131_v62, %v1837_v63 }
 0x9dd   : > { %2671 = vtanh.f32 %v1838_v0 }
 0x9e7   : > { %v2672_v3 = vpop.eup %2671 }
 0x9e8   : > { %v1841_v5 = vmul.f32 %v2672_v3, %v1840_v2 }
 0x9ea   : > { %v1843_v7 = vadd.f32 %v1842_v6, %v1841_v5 }
 0x9ec   : > { %v1852_v8 = vsel %vm1851_vm0, %v1843_v7, %v1733_v16 }
 0x9ed   : > { %1853 = vst [vmem:[#allocation2] sm:$0xff] %v1852_v8 }
 0x9ee PF: > { %p2134_p6 = scmp.ne.s32.totalorder %s2963_s9, 1 }
 0x9f0   : > { %1857 = sbr.rel (%p2134_p6) target bundleno = 3116 (0xc2c), region = 84 }
 0x9f7   : > { %2861 = dma.done.wait [#allocation5], 1024 }
 0x9f8   : > { %2862 = vsyncadd [#allocation5], 4294966272  ;;  %v2896_v13 = vmov 0.0   ;;  %vm2897_vm1 = vmmov 0   ;;  %v1864_v9 = vld [vmem:[#allocation4] sm:$0xff]  ;;  %v1865_v10 = vld [vmem:[#allocation4 + $0x8] sm:$0xff] }
 0x9f9   : > { %2421 = vmatprep.subr.bf16.mxu0 %v2896_v13  ;;  %2437 = vmatprep.mubr.msk.bf16.mxu0 %vm2897_vm1, %v2896_v13  ;;  %v1866_v11 = vld [vmem:[#allocation4 + $0x10] sm:$0xff]  ;;  %v1867_v12 = vld [vmem:[#allocation4 + $0x18] sm:$0xff]  ;;  %v1868_v43 = vld [vmem:[#allocation4 + $0x20] sm:$0xff] }
 0x9fa   : > { %2422 = vmatpush3.bf16.msra.mxu0 %v1864_v9  ;;  %v1869_v14 = vld [vmem:[#allocation4 + $0x28] sm:$0xff]  ;;  %v1870_v15 = vld [vmem:[#allocation4 + $0x30] sm:$0xff]  ;;  %v1862_v27 = vld [vmem:[#allocation2] sm:$0xff] }
 0x9fb   : > { %2423 = vmatprep.subr.bf16.mxu0 %v2896_v13  ;;  %v1871_v28 = vld [vmem:[#allocation4 + $0x38] sm:$0xff]  ;;  %v1863_v29 = vpack.c.bf16 %v1862_v27, %v1862_v27 }
 0x9fc   : > { %v2135_v57 = vld [vmem:[%s3659_s6] ss:$0 sm:$0xff] }
 0x9fe   : > { %2424 = vmatpush3.bf16.msra.mxu0 %v1865_v10 }
 0x9ff   : > { %2425 = vmatprep.subr.bf16.mxu0 %v2896_v13 }
 0xa02   : > { %2426 = vmatpush3.bf16.msra.mxu0 %v1866_v11 }
 0xa03   : > { %2427 = vmatprep.subr.bf16.mxu0 %v2896_v13 }
 0xa06   : > { %2428 = vmatpush3.bf16.msra.mxu0 %v1867_v12 }
 0xa07   : > { %2429 = vmatprep.subr.bf16.mxu0 %v2896_v13 }
 0xa0a   : > { %2430 = vmatpush3.bf16.msra.mxu0 %v1868_v43 }
 0xa0b   : > { %2431 = vmatprep.subr.bf16.mxu0 %v2896_v13 }
 0xa0e   : > { %2432 = vmatpush3.bf16.msra.mxu0 %v1869_v14 }
 0xa0f   : > { %2433 = vmatprep.subr.bf16.mxu0 %v2896_v13 }
 0xa12   : > { %2434 = vmatpush3.bf16.msra.mxu0 %v1870_v15 }
 0xa13   : > { %2435 = vmatprep.subr.bf16.mxu0 %v2896_v13 }
 0xa16   : > { %2436 = vmatpush3.bf16.msra.mxu0 %v1871_v28 }
 0xa19   : > { %2438 = vmatmul.mubr.bf16.vlgmr.msra.gmra.mrb[0].mxu0 %v1863_v29 }
 0xaec   : > { %v1913_v30 = vpop.f32.mrb[0].mxu0 }
 0xaed   : > { %v1914_v31 = vadd.f32 %v2135_v57, %v1913_v30  ;;  %v2439_v25 = vpop.f32.mrb[1].mxu0 }
 0xaee   : > { %v1916_v32 = vpop.f32.mrb[2].mxu0 }
 0xaef   : > { %1919 = vmax.xlane.f32.xlu0 %v1914_v31  ;;  %v2440_v33 = vpop.f32.mrb[3].mxu0 }
 0xb7c   : > { %v1920_v59 = vpop.xlane.xlu0 %1919 }
 0xb7d   : > { %v1921_v34 = vsub.f32 %v1914_v31, %v1920_v59 }
 0xb7f   : > { %v1922_v35 = vmul.f32 1.442695, %v1921_v34 }
 0xb81   : > { %2695 = vpow2.f32 %v1922_v35 }
 0xb8b   : > { %v2696_v36 = vpop.eup %2695 }
 0xb8c   : > { %1924 = vadd.xlane.f32.xlu0 %v2696_v36 }
 0xc19   : > { %v1925_v37 = vpop.xlane.xlu0 %1924 }
 0xc1a   : > { %2697 = vlog2.f32 %v1925_v37 }
 0xc24   : > { %v2698_v38 = vpop.eup %2697 }
 0xc25   : > { %v1927_v41 = vmul.f32 0.6931472, %v2698_v38 }
 0xc27   : > { %v1928_v42 = vadd.f32 %v1927_v41, %v1920_v59 }
 0xc29   : > { %v1929_v44 = vsub.f32 %v1914_v31, %v1928_v42 }
 0xc2b   : > { %1930 = vst [vmem:[#allocation12] sm:$0xff] %v1929_v44 }
 0xc2c PF: > { %p2474_p11 = scmp.eq.s32.totalorder %s2963_s9, 1  ;;  %s2898_s11 = smov [#allocation12]  }
 0xc2d   : > { %s1938_s21 = sshll.u32 %s2898_s11, 4  ;;  %s1939_s21 = int_to_ptr.vmem [resolvable:$true] %s1938_s21 }
 0xc2e   : > { %s2811_s13 = scalar_lea.vmem %s1939_s21, 128  ;;  %p2818_p7 = scmp.lt.s32.totalorder %s1939_s21, %s1939_s21 }
 0xc2f   : > { %p2812_p12 = scmp.ne.s32.totalorder %s1939_s21, %s2811_s13  ;;  %p2819_p13 = scmp.lt.s32.totalorder %s2811_s13, %s2811_s13 }
 0xc31   : > { %p2813_p0 = pnand %p2812_p12, %p2474_p11  ;;  %p2820_p2 = por %p2819_p13, %p2818_p7 }
 0xc33   : > { %p2814_p3 = pneg %p2813_p0 }
 0xc35   : > { %p2821_p10 = pnand %p2820_p2, %p2814_p3 }
 0xc37   : > { %2824 = shalt.err (!%p2821_p10)
}
 0xc38   : > { %s2825_s19 = scalar_lea.hbm %s3661_s8, 128 }
 0xc39   : > { %p2826_p8 = scmp.ne.s32.totalorder %s3661_s8, %s2825_s19  ;;  %p2831_p4 = scmp.lt.u32.totalorder %s2825_s19, %s3661_s8 }
 0xc3b   : > { %p2827_p9 = pnand %p2826_p8, %p2474_p11 }
 0xc3d   : > { %p2828_p1 = pneg %p2827_p9 }
 0xc3f   : > { %p2833_p5 = pnand %p2831_p4, %p2828_p1 }
 0xc41   : > { %2836 = shalt.err (!%p2833_p5)
}
 0xc42   : > { %2454 = dma.vmem_to_hbm [thread:$0]  (%p2474_p11), %s1939_s21, 128, %s3661_s8, [#allocation8]  }
 0xc43   : > { %2864 = dma.done.wait (%p2474_p11), [#allocation8], 128  }
 0xc44   : > { %2866 = vsyncadd (%p2474_p11), [#allocation8], 4294967168 }
 0xc45 PF: > { %s3677_s14 = smov %s3038_s27  ;;  %p20_p6 = scmp.ge.s32.totalorder %s3038_s27, 4  }
 0xc46   : > { %s3678_s27 = smov %s2873_s28  ;;  %s3679_s28 = smov %s2877_s29 }
 0xc47   : > { %s3680_s29 = smov %s3051_s20  ;;  %s3681_s30 = smov %s3677_s14 }
 0xc48   :  { %22 = sbr.rel (!%p20_p6) target bundleno = 5 (0x5), region = 127 }
 0xc4f   :  { %1951 = vsyncpa [#allocation7], 1 }
 0xc50   :  { %1953 = vsyncpa [#allocation7 + $0x1], 1 }
 0xc51   :  { %1954 = vsyncpa [#allocation10], 1 }
 0xc52   :  { %1955 = vsyncpa [#allocation8], 1 }
 0xc53   :  { %1957 = vsyncpa [#allocation8 + $0x1], 1 }
 0xc54   :  { %1958 = vsyncmov [#allocation5] }
 0xc57   :  { %s1959_s9 = vpop.sfrf %1958 }
 0xc58   :  { %p2140_p11 = scmp.ne.s32.totalorder %s1959_s9, 0 }
 0xc5a   :  { %1963 = shalt.err (%p2140_p11)  }

</bundles_post_ra>
